<compile_context>
chip_gen: v6e
topology: v6e:2x2x1
jax: 0.10.0
libtpu: 0.0.40
codegen_flags: <defaults>
</compile_context>

<pallas_src>
import functools

import jax
import jax.numpy as jnp
from jax import lax
from jax.experimental import pallas as pl
from jax.experimental.pallas import tpu as pltpu

EPS = 1e-5  # torch.nn.LayerNorm default eps


def _layernorm(v, w, b):
    # v: (N, E) f32, w/b: (1, E) f32 — biased variance, like torch LayerNorm
    mu = jnp.mean(v, axis=-1, keepdims=True)
    var = jnp.mean((v - mu) ** 2, axis=-1, keepdims=True)
    return (v - mu) * lax.rsqrt(var + EPS) * w + b


def block_kernel(
    x_ref,                      # (bb, T, E)
    wqkv_ref,                   # (E, 3E)  heads fused along lanes: [Q | K | V]
    wp_ref, bp_ref,             # (E, E), (1, E)
    ln1w_ref, ln1b_ref,         # (1, E) each
    ln2w_ref, ln2b_ref,         # (1, E) each
    w1_ref, b1_ref,             # (E, Hid), (1, Hid)
    w2_ref, b2_ref,             # (Hid, E), (1, E)
    o_ref,                      # (bb, T, E)
    *, num_heads, causal, f_res, matmul_dtype,
):
    bb, T, E = x_ref.shape
    H = num_heads
    hs = E // H
    md = matmul_dtype
    scale = E ** (-0.5)   # NOTE: torch code scales by embedding size C, not head size

    # flatten (batch_tile, T) into rows — sublane-dense, residuals stay in f32
    x = x_ref[...].astype(jnp.float32).reshape(bb * T, E)

    # ---- attention sublayer ----
    xn = _layernorm(x, ln1w_ref[...], ln1b_ref[...])

    # single lane-dense fused QKV matmul instead of 3*H lane-sparse ones
    qkv = jnp.dot(xn.astype(md), wqkv_ref[...],
                  preferred_element_type=jnp.float32)            # (bb*T, 3E) f32

    if causal:
        # built once, hoisted out of the head loop (JAX does not CSE broadcasts)
        row = lax.broadcasted_iota(jnp.int32, (T, T), 0)
        col = lax.broadcasted_iota(jnp.int32, (T, T), 1)
        causal_mask = (col <= row)[None]                         # (1, T, T)

    # Fold the head-concat into the output projection:
    #   concat_h(out_h) @ Wp + bp == bp + sum_h out_h @ Wp[h*hs:(h+1)*hs, :]
    attn = jnp.zeros((bb * T, E), jnp.float32) + bp_ref[...]
    for h in range(H):                                           # H is small, static
        q = qkv[:, h * hs:(h + 1) * hs].reshape(bb, T, hs)
        k = qkv[:, E + h * hs:E + (h + 1) * hs].reshape(bb, T, hs)
        v = qkv[:, 2 * E + h * hs:2 * E + (h + 1) * hs].reshape(bb, T, hs)

        # QK^T via batched dot_general, contraction on last dims (no k.T copy)
        wei = jnp.einsum("btd,bsd->bts", q.astype(md), k.astype(md),
                         preferred_element_type=jnp.float32) * scale   # (bb, T, T)
        if causal:
            wei = jnp.where(causal_mask, wei, -jnp.inf)
            m = jnp.max(wei, axis=-1, keepdims=True)
            e = jnp.exp(wei - m)
            wei = e * pl.reciprocal(jnp.sum(e, axis=-1, keepdims=True), approx=True)
        # (non-causal path applies no softmax at all — matches the torch module)

        out_h = jnp.einsum("bts,bsd->btd", wei.astype(md), v.astype(md),
                           preferred_element_type=jnp.float32)          # (bb, T, hs)
        attn = attn + jnp.dot(out_h.reshape(bb * T, hs).astype(md),
                              wp_ref[h * hs:(h + 1) * hs, :],
                              preferred_element_type=jnp.float32)

    x1 = x + attn                                                # residual in f32

    # ---- feed-forward sublayer ----
    xn2 = _layernorm(x1, ln2w_ref[...], ln2b_ref[...])
    h1 = jnp.dot(xn2.astype(md), w1_ref[...],
                 preferred_element_type=jnp.float32) + b1_ref[...]
    h1 = jnp.maximum(h1, 0.0)                                    # ReLU
    ff = jnp.dot(h1.astype(md), w2_ref[...],
                 preferred_element_type=jnp.float32) + b2_ref[...]

    y = x1 * f_res + ff
    o_ref[...] = y.reshape(bb, T, E).astype(o_ref.dtype)


def _pick_block_batch(batch, seq_len, target_rows=512):
    """Largest divisor of `batch` so that each grid step handles <=~target_rows rows."""
    bb = max(1, min(batch, target_rows // max(seq_len, 1)))
    while batch % bb:
        bb -= 1
    return bb


def _full_spec(shape):
    n = len(shape)
    return pl.BlockSpec(shape, lambda b, n=n: (0,) * n)


def transformer_block(x, params, *, num_heads, causal=True, f_res=1.0,
                      block_batch=None, matmul_dtype=jnp.bfloat16):
    B, T, E = x.shape
    H = num_heads
    hs = E // H
    hidden = params["w1"].shape[1]

    # Fuse per-head Q/K/V weights into one lane-dense (E, 3E) matrix.
    # Column block h of each E-wide section corresponds to head h (same order
    # as torch.cat([...], dim=-1) in MultiHeadAttention).
    def fuse(w):  # (H, E, hs) -> (E, H*hs)
        return jnp.transpose(w, (1, 0, 2)).reshape(E, H * hs)

    md = matmul_dtype
    wqkv = jnp.concatenate(
        [fuse(params["wq"]), fuse(params["wk"]), fuse(params["wv"])], axis=1
    ).astype(md)
    wp = params["wp"].astype(md)
    w1 = params["w1"].astype(md)
    w2 = params["w2"].astype(md)

    bb = _pick_block_batch(B, T) if block_batch is None else block_batch
    assert B % bb == 0, "block_batch must divide batch"

    kernel = functools.partial(
        block_kernel, num_heads=H, causal=causal, f_res=f_res, matmul_dtype=md
    )

    in_specs = [
        pl.BlockSpec((bb, T, E), lambda b: (b, 0, 0)),           # x (batch-tiled)
        _full_spec((E, 3 * E)),                                  # fused QKV weight
        _full_spec((E, E)), _full_spec((1, E)),                  # proj w, b
        _full_spec((1, E)), _full_spec((1, E)),                  # ln1 w, b
        _full_spec((1, E)), _full_spec((1, E)),                  # ln2 w, b
        _full_spec((E, hidden)), _full_spec((1, hidden)),        # ff w1, b1
        _full_spec((hidden, E)), _full_spec((1, E)),             # ff w2, b2
    ]

    return pl.pallas_call(
        kernel,
        out_shape=jax.ShapeDtypeStruct((B, T, E), x.dtype),
        grid=(B // bb,),
        in_specs=in_specs,
        out_specs=pl.BlockSpec((bb, T, E), lambda b: (b, 0, 0)),
        compiler_params=pltpu.CompilerParams(dimension_semantics=("parallel",)),
    )(
        x,
        wqkv,
        wp, params["bp"],
        params["ln1w"], params["ln1b"], params["ln2w"], params["ln2b"],
        w1, params["b1"], w2, params["b2"],
    )


def reference_block(x, params, *, num_heads, causal=True, f_res=1.0):
    """Pure-JAX reference matching the PyTorch forward semantics (f32 throughout)."""
    B, T, E = x.shape

    def ln(v, w, b):
        mu = jnp.mean(v, -1, keepdims=True)
        var = jnp.mean((v - mu) ** 2, -1, keepdims=True)
        return (v - mu) / jnp.sqrt(var + EPS) * w[0] + b[0]

    xn = ln(x, params["ln1w"], params["ln1b"])
    outs = []
    for h in range(num_heads):
        q = xn @ params["wq"][h]
        k = xn @ params["wk"][h]
        v = xn @ params["wv"][h]
        wei = jnp.einsum("btd,bsd->bts", q, k) * E ** (-0.5)
        if causal:
            mask = jnp.tril(jnp.ones((T, T), bool))
            wei = jnp.where(mask, wei, -jnp.inf)
            wei = jax.nn.softmax(wei, axis=-1)
        outs.append(wei @ v)
    attn = jnp.concatenate(outs, -1) @ params["wp"] + params["bp"][0]
    x1 = x + attn
    xn2 = ln(x1, params["ln2w"], params["ln2b"])
    ff = jnp.maximum(xn2 @ params["w1"] + params["b1"][0], 0.0) @ params["w2"] + params["b2"][0]
    return x1 * f_res + ff


if __name__ == "__main__":
    # small shapes consistent with the module
    B, T, E = 2, 8, 32
    num_heads = 4
    head_size = E // num_heads
    hidden = E * 4  # 128
    causal = True
    f_res = 1.0

    key = jax.random.PRNGKey(0)
    ks = jax.random.split(key, 10)
    s = 0.05
    params = {
        "wq": jax.random.normal(ks[0], (num_heads, E, head_size), jnp.float32) * s,
        "wk": jax.random.normal(ks[1], (num_heads, E, head_size), jnp.float32) * s,
        "wv": jax.random.normal(ks[2], (num_heads, E, head_size), jnp.float32) * s,
        "wp": jax.random.normal(ks[3], (E, E), jnp.float32) * s,
        "bp": jax.random.normal(ks[4], (1, E), jnp.float32) * s,
        "ln1w": jnp.ones((1, E), jnp.float32),
        "ln1b": jnp.zeros((1, E), jnp.float32),
        "ln2w": jnp.ones((1, E), jnp.float32),
        "ln2b": jnp.zeros((1, E), jnp.float32),
        "w1": jax.random.normal(ks[5], (E, hidden), jnp.float32) * s,
        "b1": jax.random.normal(ks[6], (1, hidden), jnp.float32) * s,
        "w2": jax.random.normal(ks[7], (hidden, E), jnp.float32) * s,
        "b2": jax.random.normal(ks[8], (1, E), jnp.float32) * s,
    }
    x = jax.random.normal(ks[9], (B, T, E), jnp.float32)

    out = transformer_block(x, params, num_heads=num_heads, causal=causal, f_res=f_res)
    out = jax.block_until_ready(out)

    ref = reference_block(x, params, num_heads=num_heads, causal=causal, f_res=f_res)
    assert out.shape == (B, T, E)
    # bf16 MXU matmuls inside the kernel -> slightly looser tolerance than pure f32
    assert jnp.allclose(out, ref, rtol=2e-2, atol=2e-2), "mismatch vs JAX reference"

    print("KERNEL_OK")
</pallas_src>

<mosaic_0001>
module attributes {stable_mosaic.version = 11 : i64} {
  func.func @block_kernel(%arg0: i32, %arg1: memref<2x8x32xf32, #tpu.memory_space<vmem>>, %arg2: memref<32x96xbf16, #tpu.memory_space<vmem>>, %arg3: memref<32x32xbf16, #tpu.memory_space<vmem>>, %arg4: memref<1x32xf32, #tpu.memory_space<vmem>>, %arg5: memref<1x32xf32, #tpu.memory_space<vmem>>, %arg6: memref<1x32xf32, #tpu.memory_space<vmem>>, %arg7: memref<1x32xf32, #tpu.memory_space<vmem>>, %arg8: memref<1x32xf32, #tpu.memory_space<vmem>>, %arg9: memref<32x128xbf16, #tpu.memory_space<vmem>>, %arg10: memref<1x128xf32, #tpu.memory_space<vmem>>, %arg11: memref<128x32xbf16, #tpu.memory_space<vmem>>, %arg12: memref<1x32xf32, #tpu.memory_space<vmem>>, %arg13: memref<2x8x32xf32, #tpu.memory_space<vmem>>) attributes {dimension_semantics = [#tpu.dimension_semantics<parallel>], iteration_bounds = array<i64: 1>, scalar_prefetch = 0 : i64, scratch_operands = 0 : i64, tpu.core_type = #tpu.core_type<tc>, window_params = [{transform_indices = @transform_0, window_bounds = array<i64: 2, 8, 32>}, {pipeline_mode = #tpu.pipeline_mode<synchronous>, transform_indices = @transform_1, window_bounds = array<i64: 32, 96>}, {pipeline_mode = #tpu.pipeline_mode<synchronous>, transform_indices = @transform_2, window_bounds = array<i64: 32, 32>}, {pipeline_mode = #tpu.pipeline_mode<synchronous>, transform_indices = @transform_3, window_bounds = array<i64: 1, 32>}, {pipeline_mode = #tpu.pipeline_mode<synchronous>, transform_indices = @transform_4, window_bounds = array<i64: 1, 32>}, {pipeline_mode = #tpu.pipeline_mode<synchronous>, transform_indices = @transform_5, window_bounds = array<i64: 1, 32>}, {pipeline_mode = #tpu.pipeline_mode<synchronous>, transform_indices = @transform_6, window_bounds = array<i64: 1, 32>}, {pipeline_mode = #tpu.pipeline_mode<synchronous>, transform_indices = @transform_7, window_bounds = array<i64: 1, 32>}, {pipeline_mode = #tpu.pipeline_mode<synchronous>, transform_indices = @transform_8, window_bounds = array<i64: 32, 128>}, {pipeline_mode = #tpu.pipeline_mode<synchronous>, transform_indices = @transform_9, window_bounds = array<i64: 1, 128>}, {pipeline_mode = #tpu.pipeline_mode<synchronous>, transform_indices = @transform_10, window_bounds = array<i64: 128, 32>}, {pipeline_mode = #tpu.pipeline_mode<synchronous>, transform_indices = @transform_11, window_bounds = array<i64: 1, 32>}, {transform_indices = @transform_12, window_bounds = array<i64: 2, 8, 32>}]} {
    %c0 = arith.constant 0 : index
    %c0_0 = arith.constant 0 : index
    %c0_1 = arith.constant 0 : index
    %0 = vector.load %arg1[%c0, %c0_0, %c0_1] : memref<2x8x32xf32, #tpu.memory_space<vmem>>, vector<2x8x32xf32>
    %1 = vector.shape_cast %0 : vector<2x8x32xf32> to vector<16x32xf32>
    %c0_2 = arith.constant 0 : index
    %c0_3 = arith.constant 0 : index
    %2 = vector.load %arg5[%c0_2, %c0_3] : memref<1x32xf32, #tpu.memory_space<vmem>>, vector<1x32xf32>
    %c0_4 = arith.constant 0 : index
    %c0_5 = arith.constant 0 : index
    %3 = vector.load %arg6[%c0_4, %c0_5] : memref<1x32xf32, #tpu.memory_space<vmem>>, vector<1x32xf32>
    %cst = arith.constant dense<0.000000e+00> : vector<16xf32>
    %4 = vector.multi_reduction <add>, %1, %cst [1] : vector<16x32xf32> to vector<16xf32>
    %5 = vector.shape_cast %4 : vector<16xf32> to vector<16x1xf32>
    %cst_6 = arith.constant 3.200000e+01 : f32
    %6 = vector.broadcast %cst_6 : f32 to vector<16x1xf32>
    %7 = arith.divf %5, %6 : vector<16x1xf32>
    %8 = vector.broadcast %7 : vector<16x1xf32> to vector<16x32xf32>
    %9 = arith.subf %1, %8 : vector<16x32xf32>
    %10 = arith.mulf %9, %9 : vector<16x32xf32>
    %cst_7 = arith.constant dense<0.000000e+00> : vector<16xf32>
    %11 = vector.multi_reduction <add>, %10, %cst_7 [1] : vector<16x32xf32> to vector<16xf32>
    %12 = vector.shape_cast %11 : vector<16xf32> to vector<16x1xf32>
    %cst_8 = arith.constant 3.200000e+01 : f32
    %13 = vector.broadcast %cst_8 : f32 to vector<16x1xf32>
    %14 = arith.divf %12, %13 : vector<16x1xf32>
    %15 = vector.broadcast %7 : vector<16x1xf32> to vector<16x32xf32>
    %16 = arith.subf %1, %15 : vector<16x32xf32>
    %cst_9 = arith.constant 9.99999974E-6 : f32
    %17 = vector.broadcast %cst_9 : f32 to vector<16x1xf32>
    %18 = arith.addf %14, %17 : vector<16x1xf32>
    %19 = math.rsqrt %18 : vector<16x1xf32>
    %20 = vector.broadcast %19 : vector<16x1xf32> to vector<16x32xf32>
    %21 = arith.mulf %16, %20 : vector<16x32xf32>
    %22 = vector.broadcast %2 : vector<1x32xf32> to vector<16x32xf32>
    %23 = arith.mulf %21, %22 : vector<16x32xf32>
    %24 = vector.broadcast %3 : vector<1x32xf32> to vector<16x32xf32>
    %25 = arith.addf %23, %24 : vector<16x32xf32>
    %26 = arith.truncf %25 : vector<16x32xf32> to vector<16x32xbf16>
    %c0_10 = arith.constant 0 : index
    %c0_11 = arith.constant 0 : index
    %27 = vector.load %arg2[%c0_10, %c0_11] : memref<32x96xbf16, #tpu.memory_space<vmem>>, vector<32x96xbf16>
    %cst_12 = arith.constant dense<0.000000e+00> : vector<16x96xf32>
    %28 = tpu.matmul %26, %27, %cst_12 {dimension_numbers = #tpu.dot_dimension_numbers<[1], [0], [0], [1], [0, 0, 1, 1], [], []>} : vector<16x32xbf16>, vector<32x96xbf16>, vector<16x96xf32> -> vector<16x96xf32>
    %29 = tpu.iota {dimensions = array<i32: 0>} : vector<8x8xi32>
    %30 = tpu.iota {dimensions = array<i32: 1>} : vector<8x8xi32>
    %31 = arith.cmpi sle, %30, %29 : vector<8x8xi32>
    %32 = vector.shape_cast %31 : vector<8x8xi1> to vector<1x8x8xi1>
    %cst_13 = arith.constant 0.000000e+00 : f32
    %33 = vector.broadcast %cst_13 : f32 to vector<16x32xf32>
    %c0_14 = arith.constant 0 : index
    %c0_15 = arith.constant 0 : index
    %34 = vector.load %arg4[%c0_14, %c0_15] : memref<1x32xf32, #tpu.memory_space<vmem>>, vector<1x32xf32>
    %35 = vector.broadcast %34 : vector<1x32xf32> to vector<16x32xf32>
    %36 = arith.addf %33, %35 : vector<16x32xf32>
    %37 = vector.extract_strided_slice %28 {offsets = [0, 0], sizes = [16, 8], strides = [1, 1]} : vector<16x96xf32> to vector<16x8xf32>
    %38 = vector.shape_cast %37 : vector<16x8xf32> to vector<2x8x8xf32>
    %39 = vector.extract_strided_slice %28 {offsets = [0, 32], sizes = [16, 8], strides = [1, 1]} : vector<16x96xf32> to vector<16x8xf32>
    %40 = vector.shape_cast %39 : vector<16x8xf32> to vector<2x8x8xf32>
    %41 = vector.extract_strided_slice %28 {offsets = [0, 64], sizes = [16, 8], strides = [1, 1]} : vector<16x96xf32> to vector<16x8xf32>
    %42 = vector.shape_cast %41 : vector<16x8xf32> to vector<2x8x8xf32>
    %43 = arith.truncf %38 : vector<2x8x8xf32> to vector<2x8x8xbf16>
    %44 = arith.truncf %40 : vector<2x8x8xf32> to vector<2x8x8xbf16>
    "tpu.trace_start"() <{level = 10 : i32, message = "btd,bsd->bts"}> : () -> ()
    %cst_16 = arith.constant dense<0.000000e+00> : vector<2x8x8xf32>
    %45 = tpu.matmul %43, %44, %cst_16 {dimension_numbers = #tpu.dot_dimension_numbers<[2], [2], [1], [1], [0, 0, 0, 1, 1, 1], [0], [0]>} : vector<2x8x8xbf16>, vector<2x8x8xbf16>, vector<2x8x8xf32> -> vector<2x8x8xf32>
    "tpu.trace_stop"() : () -> ()
    %cst_17 = arith.constant 0.176776692 : f32
    %46 = vector.broadcast %cst_17 : f32 to vector<2x8x8xf32>
    %47 = arith.mulf %45, %46 : vector<2x8x8xf32>
    %cst_18 = arith.constant 0xFF800000 : f32
    %48 = vector.shape_cast %32 : vector<1x8x8xi1> to vector<1x8x8xi1>
    %49 = vector.broadcast %48 : vector<1x8x8xi1> to vector<2x8x8xi1>
    %50 = vector.broadcast %cst_18 : f32 to vector<2x8x8xf32>
    %51 = arith.select %49, %47, %50 : vector<2x8x8xi1>, vector<2x8x8xf32>
    %cst_19 = arith.constant dense<0xFF800000> : vector<2x8xf32>
    %52 = vector.multi_reduction <maximumf>, %51, %cst_19 [2] : vector<2x8x8xf32> to vector<2x8xf32>
    %53 = vector.shape_cast %52 : vector<2x8xf32> to vector<2x8x1xf32>
    %54 = vector.broadcast %53 : vector<2x8x1xf32> to vector<2x8x8xf32>
    %55 = arith.subf %51, %54 : vector<2x8x8xf32>
    %56 = math.exp %55 : vector<2x8x8xf32>
    %cst_20 = arith.constant dense<0.000000e+00> : vector<2x8xf32>
    %57 = vector.multi_reduction <add>, %56, %cst_20 [2] : vector<2x8x8xf32> to vector<2x8xf32>
    %58 = vector.shape_cast %57 : vector<2x8xf32> to vector<2x8x1xf32>
    %59 = tpu.reciprocal %58 {approx = true} : vector<2x8x1xf32> -> vector<2x8x1xf32>
    %60 = vector.broadcast %59 : vector<2x8x1xf32> to vector<2x8x8xf32>
    %61 = arith.mulf %56, %60 : vector<2x8x8xf32>
    %62 = arith.truncf %61 : vector<2x8x8xf32> to vector<2x8x8xbf16>
    %63 = arith.truncf %42 : vector<2x8x8xf32> to vector<2x8x8xbf16>
    "tpu.trace_start"() <{level = 10 : i32, message = "bts,bsd->btd"}> : () -> ()
    %cst_21 = arith.constant dense<0.000000e+00> : vector<2x8x8xf32>
    %64 = tpu.matmul %62, %63, %cst_21 {dimension_numbers = #tpu.dot_dimension_numbers<[2], [1], [1], [2], [0, 0, 0, 1, 1, 2], [0], [0]>} : vector<2x8x8xbf16>, vector<2x8x8xbf16>, vector<2x8x8xf32> -> vector<2x8x8xf32>
    "tpu.trace_stop"() : () -> ()
    %65 = vector.shape_cast %64 : vector<2x8x8xf32> to vector<16x8xf32>
    %66 = arith.truncf %65 : vector<16x8xf32> to vector<16x8xbf16>
    %c0_22 = arith.constant 0 : index
    %c0_23 = arith.constant 0 : index
    %67 = vector.load %arg3[%c0_22, %c0_23] : memref<32x32xbf16, #tpu.memory_space<vmem>>, vector<8x32xbf16>
    %cst_24 = arith.constant dense<0.000000e+00> : vector<16x32xf32>
    %68 = tpu.matmul %66, %67, %cst_24 {dimension_numbers = #tpu.dot_dimension_numbers<[1], [0], [0], [1], [0, 0, 1, 1], [], []>} : vector<16x8xbf16>, vector<8x32xbf16>, vector<16x32xf32> -> vector<16x32xf32>
    %69 = arith.addf %36, %68 : vector<16x32xf32>
    %70 = vector.extract_strided_slice %28 {offsets = [0, 8], sizes = [16, 8], strides = [1, 1]} : vector<16x96xf32> to vector<16x8xf32>
    %71 = vector.shape_cast %70 : vector<16x8xf32> to vector<2x8x8xf32>
    %72 = vector.extract_strided_slice %28 {offsets = [0, 40], sizes = [16, 8], strides = [1, 1]} : vector<16x96xf32> to vector<16x8xf32>
    %73 = vector.shape_cast %72 : vector<16x8xf32> to vector<2x8x8xf32>
    %74 = vector.extract_strided_slice %28 {offsets = [0, 72], sizes = [16, 8], strides = [1, 1]} : vector<16x96xf32> to vector<16x8xf32>
    %75 = vector.shape_cast %74 : vector<16x8xf32> to vector<2x8x8xf32>
    %76 = arith.truncf %71 : vector<2x8x8xf32> to vector<2x8x8xbf16>
    %77 = arith.truncf %73 : vector<2x8x8xf32> to vector<2x8x8xbf16>
    "tpu.trace_start"() <{level = 10 : i32, message = "btd,bsd->bts"}> : () -> ()
    %cst_25 = arith.constant dense<0.000000e+00> : vector<2x8x8xf32>
    %78 = tpu.matmul %76, %77, %cst_25 {dimension_numbers = #tpu.dot_dimension_numbers<[2], [2], [1], [1], [0, 0, 0, 1, 1, 1], [0], [0]>} : vector<2x8x8xbf16>, vector<2x8x8xbf16>, vector<2x8x8xf32> -> vector<2x8x8xf32>
    "tpu.trace_stop"() : () -> ()
    %cst_26 = arith.constant 0.176776692 : f32
    %79 = vector.broadcast %cst_26 : f32 to vector<2x8x8xf32>
    %80 = arith.mulf %78, %79 : vector<2x8x8xf32>
    %cst_27 = arith.constant 0xFF800000 : f32
    %81 = vector.shape_cast %32 : vector<1x8x8xi1> to vector<1x8x8xi1>
    %82 = vector.broadcast %81 : vector<1x8x8xi1> to vector<2x8x8xi1>
    %83 = vector.broadcast %cst_27 : f32 to vector<2x8x8xf32>
    %84 = arith.select %82, %80, %83 : vector<2x8x8xi1>, vector<2x8x8xf32>
    %cst_28 = arith.constant dense<0xFF800000> : vector<2x8xf32>
    %85 = vector.multi_reduction <maximumf>, %84, %cst_28 [2] : vector<2x8x8xf32> to vector<2x8xf32>
    %86 = vector.shape_cast %85 : vector<2x8xf32> to vector<2x8x1xf32>
    %87 = vector.broadcast %86 : vector<2x8x1xf32> to vector<2x8x8xf32>
    %88 = arith.subf %84, %87 : vector<2x8x8xf32>
    %89 = math.exp %88 : vector<2x8x8xf32>
    %cst_29 = arith.constant dense<0.000000e+00> : vector<2x8xf32>
    %90 = vector.multi_reduction <add>, %89, %cst_29 [2] : vector<2x8x8xf32> to vector<2x8xf32>
    %91 = vector.shape_cast %90 : vector<2x8xf32> to vector<2x8x1xf32>
    %92 = tpu.reciprocal %91 {approx = true} : vector<2x8x1xf32> -> vector<2x8x1xf32>
    %93 = vector.broadcast %92 : vector<2x8x1xf32> to vector<2x8x8xf32>
    %94 = arith.mulf %89, %93 : vector<2x8x8xf32>
    %95 = arith.truncf %94 : vector<2x8x8xf32> to vector<2x8x8xbf16>
    %96 = arith.truncf %75 : vector<2x8x8xf32> to vector<2x8x8xbf16>
    "tpu.trace_start"() <{level = 10 : i32, message = "bts,bsd->btd"}> : () -> ()
    %cst_30 = arith.constant dense<0.000000e+00> : vector<2x8x8xf32>
    %97 = tpu.matmul %95, %96, %cst_30 {dimension_numbers = #tpu.dot_dimension_numbers<[2], [1], [1], [2], [0, 0, 0, 1, 1, 2], [0], [0]>} : vector<2x8x8xbf16>, vector<2x8x8xbf16>, vector<2x8x8xf32> -> vector<2x8x8xf32>
    "tpu.trace_stop"() : () -> ()
    %98 = vector.shape_cast %97 : vector<2x8x8xf32> to vector<16x8xf32>
    %99 = arith.truncf %98 : vector<16x8xf32> to vector<16x8xbf16>
    %c8 = arith.constant 8 : index
    %c0_31 = arith.constant 0 : index
    %100 = vector.load %arg3[%c8, %c0_31] : memref<32x32xbf16, #tpu.memory_space<vmem>>, vector<8x32xbf16>
    %cst_32 = arith.constant dense<0.000000e+00> : vector<16x32xf32>
    %101 = tpu.matmul %99, %100, %cst_32 {dimension_numbers = #tpu.dot_dimension_numbers<[1], [0], [0], [1], [0, 0, 1, 1], [], []>} : vector<16x8xbf16>, vector<8x32xbf16>, vector<16x32xf32> -> vector<16x32xf32>
    %102 = arith.addf %69, %101 : vector<16x32xf32>
    %103 = vector.extract_strided_slice %28 {offsets = [0, 16], sizes = [16, 8], strides = [1, 1]} : vector<16x96xf32> to vector<16x8xf32>
    %104 = vector.shape_cast %103 : vector<16x8xf32> to vector<2x8x8xf32>
    %105 = vector.extract_strided_slice %28 {offsets = [0, 48], sizes = [16, 8], strides = [1, 1]} : vector<16x96xf32> to vector<16x8xf32>
    %106 = vector.shape_cast %105 : vector<16x8xf32> to vector<2x8x8xf32>
    %107 = vector.extract_strided_slice %28 {offsets = [0, 80], sizes = [16, 8], strides = [1, 1]} : vector<16x96xf32> to vector<16x8xf32>
    %108 = vector.shape_cast %107 : vector<16x8xf32> to vector<2x8x8xf32>
    %109 = arith.truncf %104 : vector<2x8x8xf32> to vector<2x8x8xbf16>
    %110 = arith.truncf %106 : vector<2x8x8xf32> to vector<2x8x8xbf16>
    "tpu.trace_start"() <{level = 10 : i32, message = "btd,bsd->bts"}> : () -> ()
    %cst_33 = arith.constant dense<0.000000e+00> : vector<2x8x8xf32>
    %111 = tpu.matmul %109, %110, %cst_33 {dimension_numbers = #tpu.dot_dimension_numbers<[2], [2], [1], [1], [0, 0, 0, 1, 1, 1], [0], [0]>} : vector<2x8x8xbf16>, vector<2x8x8xbf16>, vector<2x8x8xf32> -> vector<2x8x8xf32>
    "tpu.trace_stop"() : () -> ()
    %cst_34 = arith.constant 0.176776692 : f32
    %112 = vector.broadcast %cst_34 : f32 to vector<2x8x8xf32>
    %113 = arith.mulf %111, %112 : vector<2x8x8xf32>
    %cst_35 = arith.constant 0xFF800000 : f32
    %114 = vector.shape_cast %32 : vector<1x8x8xi1> to vector<1x8x8xi1>
    %115 = vector.broadcast %114 : vector<1x8x8xi1> to vector<2x8x8xi1>
    %116 = vector.broadcast %cst_35 : f32 to vector<2x8x8xf32>
    %117 = arith.select %115, %113, %116 : vector<2x8x8xi1>, vector<2x8x8xf32>
    %cst_36 = arith.constant dense<0xFF800000> : vector<2x8xf32>
    %118 = vector.multi_reduction <maximumf>, %117, %cst_36 [2] : vector<2x8x8xf32> to vector<2x8xf32>
    %119 = vector.shape_cast %118 : vector<2x8xf32> to vector<2x8x1xf32>
    %120 = vector.broadcast %119 : vector<2x8x1xf32> to vector<2x8x8xf32>
    %121 = arith.subf %117, %120 : vector<2x8x8xf32>
    %122 = math.exp %121 : vector<2x8x8xf32>
    %cst_37 = arith.constant dense<0.000000e+00> : vector<2x8xf32>
    %123 = vector.multi_reduction <add>, %122, %cst_37 [2] : vector<2x8x8xf32> to vector<2x8xf32>
    %124 = vector.shape_cast %123 : vector<2x8xf32> to vector<2x8x1xf32>
    %125 = tpu.reciprocal %124 {approx = true} : vector<2x8x1xf32> -> vector<2x8x1xf32>
    %126 = vector.broadcast %125 : vector<2x8x1xf32> to vector<2x8x8xf32>
    %127 = arith.mulf %122, %126 : vector<2x8x8xf32>
    %128 = arith.truncf %127 : vector<2x8x8xf32> to vector<2x8x8xbf16>
    %129 = arith.truncf %108 : vector<2x8x8xf32> to vector<2x8x8xbf16>
    "tpu.trace_start"() <{level = 10 : i32, message = "bts,bsd->btd"}> : () -> ()
    %cst_38 = arith.constant dense<0.000000e+00> : vector<2x8x8xf32>
    %130 = tpu.matmul %128, %129, %cst_38 {dimension_numbers = #tpu.dot_dimension_numbers<[2], [1], [1], [2], [0, 0, 0, 1, 1, 2], [0], [0]>} : vector<2x8x8xbf16>, vector<2x8x8xbf16>, vector<2x8x8xf32> -> vector<2x8x8xf32>
    "tpu.trace_stop"() : () -> ()
    %131 = vector.shape_cast %130 : vector<2x8x8xf32> to vector<16x8xf32>
    %132 = arith.truncf %131 : vector<16x8xf32> to vector<16x8xbf16>
    %c16 = arith.constant 16 : index
    %c0_39 = arith.constant 0 : index
    %133 = vector.load %arg3[%c16, %c0_39] : memref<32x32xbf16, #tpu.memory_space<vmem>>, vector<8x32xbf16>
    %cst_40 = arith.constant dense<0.000000e+00> : vector<16x32xf32>
    %134 = tpu.matmul %132, %133, %cst_40 {dimension_numbers = #tpu.dot_dimension_numbers<[1], [0], [0], [1], [0, 0, 1, 1], [], []>} : vector<16x8xbf16>, vector<8x32xbf16>, vector<16x32xf32> -> vector<16x32xf32>
    %135 = arith.addf %102, %134 : vector<16x32xf32>
    %136 = vector.extract_strided_slice %28 {offsets = [0, 24], sizes = [16, 8], strides = [1, 1]} : vector<16x96xf32> to vector<16x8xf32>
    %137 = vector.shape_cast %136 : vector<16x8xf32> to vector<2x8x8xf32>
    %138 = vector.extract_strided_slice %28 {offsets = [0, 56], sizes = [16, 8], strides = [1, 1]} : vector<16x96xf32> to vector<16x8xf32>
    %139 = vector.shape_cast %138 : vector<16x8xf32> to vector<2x8x8xf32>
    %140 = vector.extract_strided_slice %28 {offsets = [0, 88], sizes = [16, 8], strides = [1, 1]} : vector<16x96xf32> to vector<16x8xf32>
    %141 = vector.shape_cast %140 : vector<16x8xf32> to vector<2x8x8xf32>
    %142 = arith.truncf %137 : vector<2x8x8xf32> to vector<2x8x8xbf16>
    %143 = arith.truncf %139 : vector<2x8x8xf32> to vector<2x8x8xbf16>
    "tpu.trace_start"() <{level = 10 : i32, message = "btd,bsd->bts"}> : () -> ()
    %cst_41 = arith.constant dense<0.000000e+00> : vector<2x8x8xf32>
    %144 = tpu.matmul %142, %143, %cst_41 {dimension_numbers = #tpu.dot_dimension_numbers<[2], [2], [1], [1], [0, 0, 0, 1, 1, 1], [0], [0]>} : vector<2x8x8xbf16>, vector<2x8x8xbf16>, vector<2x8x8xf32> -> vector<2x8x8xf32>
    "tpu.trace_stop"() : () -> ()
    %cst_42 = arith.constant 0.176776692 : f32
    %145 = vector.broadcast %cst_42 : f32 to vector<2x8x8xf32>
    %146 = arith.mulf %144, %145 : vector<2x8x8xf32>
    %cst_43 = arith.constant 0xFF800000 : f32
    %147 = vector.shape_cast %32 : vector<1x8x8xi1> to vector<1x8x8xi1>
    %148 = vector.broadcast %147 : vector<1x8x8xi1> to vector<2x8x8xi1>
    %149 = vector.broadcast %cst_43 : f32 to vector<2x8x8xf32>
    %150 = arith.select %148, %146, %149 : vector<2x8x8xi1>, vector<2x8x8xf32>
    %cst_44 = arith.constant dense<0xFF800000> : vector<2x8xf32>
    %151 = vector.multi_reduction <maximumf>, %150, %cst_44 [2] : vector<2x8x8xf32> to vector<2x8xf32>
    %152 = vector.shape_cast %151 : vector<2x8xf32> to vector<2x8x1xf32>
    %153 = vector.broadcast %152 : vector<2x8x1xf32> to vector<2x8x8xf32>
    %154 = arith.subf %150, %153 : vector<2x8x8xf32>
    %155 = math.exp %154 : vector<2x8x8xf32>
    %cst_45 = arith.constant dense<0.000000e+00> : vector<2x8xf32>
    %156 = vector.multi_reduction <add>, %155, %cst_45 [2] : vector<2x8x8xf32> to vector<2x8xf32>
    %157 = vector.shape_cast %156 : vector<2x8xf32> to vector<2x8x1xf32>
    %158 = tpu.reciprocal %157 {approx = true} : vector<2x8x1xf32> -> vector<2x8x1xf32>
    %159 = vector.broadcast %158 : vector<2x8x1xf32> to vector<2x8x8xf32>
    %160 = arith.mulf %155, %159 : vector<2x8x8xf32>
    %161 = arith.truncf %160 : vector<2x8x8xf32> to vector<2x8x8xbf16>
    %162 = arith.truncf %141 : vector<2x8x8xf32> to vector<2x8x8xbf16>
    "tpu.trace_start"() <{level = 10 : i32, message = "bts,bsd->btd"}> : () -> ()
    %cst_46 = arith.constant dense<0.000000e+00> : vector<2x8x8xf32>
    %163 = tpu.matmul %161, %162, %cst_46 {dimension_numbers = #tpu.dot_dimension_numbers<[2], [1], [1], [2], [0, 0, 0, 1, 1, 2], [0], [0]>} : vector<2x8x8xbf16>, vector<2x8x8xbf16>, vector<2x8x8xf32> -> vector<2x8x8xf32>
    "tpu.trace_stop"() : () -> ()
    %164 = vector.shape_cast %163 : vector<2x8x8xf32> to vector<16x8xf32>
    %165 = arith.truncf %164 : vector<16x8xf32> to vector<16x8xbf16>
    %c24 = arith.constant 24 : index
    %c0_47 = arith.constant 0 : index
    %166 = vector.load %arg3[%c24, %c0_47] : memref<32x32xbf16, #tpu.memory_space<vmem>>, vector<8x32xbf16>
    %cst_48 = arith.constant dense<0.000000e+00> : vector<16x32xf32>
    %167 = tpu.matmul %165, %166, %cst_48 {dimension_numbers = #tpu.dot_dimension_numbers<[1], [0], [0], [1], [0, 0, 1, 1], [], []>} : vector<16x8xbf16>, vector<8x32xbf16>, vector<16x32xf32> -> vector<16x32xf32>
    %168 = arith.addf %135, %167 : vector<16x32xf32>
    %169 = arith.addf %1, %168 : vector<16x32xf32>
    %c0_49 = arith.constant 0 : index
    %c0_50 = arith.constant 0 : index
    %170 = vector.load %arg7[%c0_49, %c0_50] : memref<1x32xf32, #tpu.memory_space<vmem>>, vector<1x32xf32>
    %c0_51 = arith.constant 0 : index
    %c0_52 = arith.constant 0 : index
    %171 = vector.load %arg8[%c0_51, %c0_52] : memref<1x32xf32, #tpu.memory_space<vmem>>, vector<1x32xf32>
    %cst_53 = arith.constant dense<0.000000e+00> : vector<16xf32>
    %172 = vector.multi_reduction <add>, %169, %cst_53 [1] : vector<16x32xf32> to vector<16xf32>
    %173 = vector.shape_cast %172 : vector<16xf32> to vector<16x1xf32>
    %cst_54 = arith.constant 3.200000e+01 : f32
    %174 = vector.broadcast %cst_54 : f32 to vector<16x1xf32>
    %175 = arith.divf %173, %174 : vector<16x1xf32>
    %176 = vector.broadcast %175 : vector<16x1xf32> to vector<16x32xf32>
    %177 = arith.subf %169, %176 : vector<16x32xf32>
    %178 = arith.mulf %177, %177 : vector<16x32xf32>
    %cst_55 = arith.constant dense<0.000000e+00> : vector<16xf32>
    %179 = vector.multi_reduction <add>, %178, %cst_55 [1] : vector<16x32xf32> to vector<16xf32>
    %180 = vector.shape_cast %179 : vector<16xf32> to vector<16x1xf32>
    %cst_56 = arith.constant 3.200000e+01 : f32
    %181 = vector.broadcast %cst_56 : f32 to vector<16x1xf32>
    %182 = arith.divf %180, %181 : vector<16x1xf32>
    %183 = vector.broadcast %175 : vector<16x1xf32> to vector<16x32xf32>
    %184 = arith.subf %169, %183 : vector<16x32xf32>
    %cst_57 = arith.constant 9.99999974E-6 : f32
    %185 = vector.broadcast %cst_57 : f32 to vector<16x1xf32>
    %186 = arith.addf %182, %185 : vector<16x1xf32>
    %187 = math.rsqrt %186 : vector<16x1xf32>
    %188 = vector.broadcast %187 : vector<16x1xf32> to vector<16x32xf32>
    %189 = arith.mulf %184, %188 : vector<16x32xf32>
    %190 = vector.broadcast %170 : vector<1x32xf32> to vector<16x32xf32>
    %191 = arith.mulf %189, %190 : vector<16x32xf32>
    %192 = vector.broadcast %171 : vector<1x32xf32> to vector<16x32xf32>
    %193 = arith.addf %191, %192 : vector<16x32xf32>
    %194 = arith.truncf %193 : vector<16x32xf32> to vector<16x32xbf16>
    %c0_58 = arith.constant 0 : index
    %c0_59 = arith.constant 0 : index
    %195 = vector.load %arg9[%c0_58, %c0_59] : memref<32x128xbf16, #tpu.memory_space<vmem>>, vector<32x128xbf16>
    %cst_60 = arith.constant dense<0.000000e+00> : vector<16x128xf32>
    %196 = tpu.matmul %194, %195, %cst_60 {dimension_numbers = #tpu.dot_dimension_numbers<[1], [0], [0], [1], [0, 0, 1, 1], [], []>} : vector<16x32xbf16>, vector<32x128xbf16>, vector<16x128xf32> -> vector<16x128xf32>
    %c0_61 = arith.constant 0 : index
    %c0_62 = arith.constant 0 : index
    %197 = vector.load %arg10[%c0_61, %c0_62] : memref<1x128xf32, #tpu.memory_space<vmem>>, vector<1x128xf32>
    %198 = vector.broadcast %197 : vector<1x128xf32> to vector<16x128xf32>
    %199 = arith.addf %196, %198 : vector<16x128xf32>
    %cst_63 = arith.constant 0.000000e+00 : f32
    %200 = vector.broadcast %cst_63 : f32 to vector<16x128xf32>
    %201 = arith.maximumf %199, %200 : vector<16x128xf32>
    %202 = arith.truncf %201 : vector<16x128xf32> to vector<16x128xbf16>
    %c0_64 = arith.constant 0 : index
    %c0_65 = arith.constant 0 : index
    %203 = vector.load %arg11[%c0_64, %c0_65] : memref<128x32xbf16, #tpu.memory_space<vmem>>, vector<128x32xbf16>
    %cst_66 = arith.constant dense<0.000000e+00> : vector<16x32xf32>
    %204 = tpu.matmul %202, %203, %cst_66 {dimension_numbers = #tpu.dot_dimension_numbers<[1], [0], [0], [1], [0, 0, 1, 1], [], []>} : vector<16x128xbf16>, vector<128x32xbf16>, vector<16x32xf32> -> vector<16x32xf32>
    %c0_67 = arith.constant 0 : index
    %c0_68 = arith.constant 0 : index
    %205 = vector.load %arg12[%c0_67, %c0_68] : memref<1x32xf32, #tpu.memory_space<vmem>>, vector<1x32xf32>
    %206 = vector.broadcast %205 : vector<1x32xf32> to vector<16x32xf32>
    %207 = arith.addf %204, %206 : vector<16x32xf32>
    %cst_69 = arith.constant 1.000000e+00 : f32
    %208 = vector.broadcast %cst_69 : f32 to vector<16x32xf32>
    %209 = arith.mulf %169, %208 : vector<16x32xf32>
    %210 = arith.addf %209, %207 : vector<16x32xf32>
    %211 = vector.shape_cast %210 : vector<16x32xf32> to vector<2x8x32xf32>
    %c0_70 = arith.constant 0 : index
    %c0_71 = arith.constant 0 : index
    %c0_72 = arith.constant 0 : index
    %212 = vector.load %arg13[%c0_70, %c0_71, %c0_72] : memref<2x8x32xf32, #tpu.memory_space<vmem>>, vector<2x8x32xf32>
    tpu.vector_store %arg13[%c0_70, %c0_71, %c0_72], %211 {strides = array<i32>} : memref<2x8x32xf32, #tpu.memory_space<vmem>>, vector<2x8x32xf32>,
    return
  }
  func.func @transform_0(%arg0: i32) -> (i32, i32, i32) {
    %c0_i32 = arith.constant 0 : i32
    %c0_i32_0 = arith.constant 0 : i32
    %c0_i32_1 = arith.constant 0 : i32
    return %arg0, %c0_i32, %c0_i32_0 : i32, i32, i32
  }
  func.func @transform_1(%arg0: i32) -> (i32, i32) {
    %c0_i32 = arith.constant 0 : i32
    %c0_i32_0 = arith.constant 0 : i32
    %c0_i32_1 = arith.constant 0 : i32
    return %c0_i32, %c0_i32_0 : i32, i32
  }
  func.func @transform_2(%arg0: i32) -> (i32, i32) {
    %c0_i32 = arith.constant 0 : i32
    %c0_i32_0 = arith.constant 0 : i32
    %c0_i32_1 = arith.constant 0 : i32
    return %c0_i32, %c0_i32_0 : i32, i32
  }
  func.func @transform_3(%arg0: i32) -> (i32, i32) {
    %c0_i32 = arith.constant 0 : i32
    %c0_i32_0 = arith.constant 0 : i32
    %c0_i32_1 = arith.constant 0 : i32
    return %c0_i32, %c0_i32_0 : i32, i32
  }
  func.func @transform_4(%arg0: i32) -> (i32, i32) {
    %c0_i32 = arith.constant 0 : i32
    %c0_i32_0 = arith.constant 0 : i32
    %c0_i32_1 = arith.constant 0 : i32
    return %c0_i32, %c0_i32_0 : i32, i32
  }
  func.func @transform_5(%arg0: i32) -> (i32, i32) {
    %c0_i32 = arith.constant 0 : i32
    %c0_i32_0 = arith.constant 0 : i32
    %c0_i32_1 = arith.constant 0 : i32
    return %c0_i32, %c0_i32_0 : i32, i32
  }
  func.func @transform_6(%arg0: i32) -> (i32, i32) {
    %c0_i32 = arith.constant 0 : i32
    %c0_i32_0 = arith.constant 0 : i32
    %c0_i32_1 = arith.constant 0 : i32
    return %c0_i32, %c0_i32_0 : i32, i32
  }
  func.func @transform_7(%arg0: i32) -> (i32, i32) {
    %c0_i32 = arith.constant 0 : i32
    %c0_i32_0 = arith.constant 0 : i32
    %c0_i32_1 = arith.constant 0 : i32
    return %c0_i32, %c0_i32_0 : i32, i32
  }
  func.func @transform_8(%arg0: i32) -> (i32, i32) {
    %c0_i32 = arith.constant 0 : i32
    %c0_i32_0 = arith.constant 0 : i32
    %c0_i32_1 = arith.constant 0 : i32
    return %c0_i32, %c0_i32_0 : i32, i32
  }
  func.func @transform_9(%arg0: i32) -> (i32, i32) {
    %c0_i32 = arith.constant 0 : i32
    %c0_i32_0 = arith.constant 0 : i32
    %c0_i32_1 = arith.constant 0 : i32
    return %c0_i32, %c0_i32_0 : i32, i32
  }
  func.func @transform_10(%arg0: i32) -> (i32, i32) {
    %c0_i32 = arith.constant 0 : i32
    %c0_i32_0 = arith.constant 0 : i32
    %c0_i32_1 = arith.constant 0 : i32
    return %c0_i32, %c0_i32_0 : i32, i32
  }
  func.func @transform_11(%arg0: i32) -> (i32, i32) {
    %c0_i32 = arith.constant 0 : i32
    %c0_i32_0 = arith.constant 0 : i32
    %c0_i32_1 = arith.constant 0 : i32
    return %c0_i32, %c0_i32_0 : i32, i32
  }
  func.func @transform_12(%arg0: i32) -> (i32, i32, i32) {
    %c0_i32 = arith.constant 0 : i32
    %c0_i32_0 = arith.constant 0 : i32
    %c0_i32_1 = arith.constant 0 : i32
    return %arg0, %c0_i32, %c0_i32_0 : i32, i32, i32
  }
}

</mosaic_0001>

<bundles_post_ra>
// kernel: tpu_custom_call.1
= control target key start
LH: loop header
LB: loop body
LE: loop exit
PB: predicated region body
PF: predicated region fallthrough
CT: control target
= control target key end

     0   :  { %vm47_vm0 = vcmask 261120   ;;  %s2245_s0 = inlined_call_operand.vmem [shape: f32[2,8,32], index: 0, kind: input, shape index: {}]   ;;  %s2246_s1 = inlined_call_operand.vmem [shape: bf16[32,96], index: 1, kind: input, shape index: {}]   ;;  %s2247_s2 = inlined_call_operand.vmem [shape: bf16[32,32], index: 2, kind: input, shape index: {}]   ;;  %s2248_s3 = inlined_call_operand.vmem [shape: f32[1,32], index: 3, kind: input, shape index: {}]   ;;  %s2249_s4 = inlined_call_operand.vmem [shape: f32[1,32], index: 4, kind: input, shape index: {}]   ;;  %s2250_s5 = inlined_call_operand.vmem [shape: f32[1,32], index: 5, kind: input, shape index: {}]   ;;  %s2251_s6 = inlined_call_operand.vmem [shape: f32[1,32], index: 6, kind: input, shape index: {}]   ;;  %s2252_s7 = inlined_call_operand.vmem [shape: f32[1,32], index: 7, kind: input, shape index: {}]   ;;  %s2253_s8 = inlined_call_operand.vmem [shape: bf16[32,128], index: 8, kind: input, shape index: {}]   ;;  %s2254_s9 = inlined_call_operand.vmem [shape: f32[1,128], index: 9, kind: input, shape index: {}]   ;;  %s2255_s10 = inlined_call_operand.vmem [shape: bf16[128,32], index: 10, kind: input, shape index: {}]   ;;  %s2256_s11 = inlined_call_operand.vmem [shape: f32[1,32], index: 11, kind: input, shape index: {}]   ;;  %s2257_s12 = inlined_call_operand.hbm [shape: f32[2,8,32], index: 12, kind: output, shape index: {}]  }
   0x1   :  { %v1944_v0 = vld [vmem:[%s2245_s0] sm:$0xff]  ;;  %v1949_v1 = vld [vmem:[%s2245_s0 + $0x8] sm:$0xff] }
   0x2   :  { %v48_v2 = vsel %vm47_vm0, %v1944_v0, 0.0  ;;  %v51_v3 = vsel %vm47_vm0, %v1949_v1, 0.0 }
   0x3   :  { %49 = vadd.xlane.f32.xlu0 %v48_v2 }
   0x7   :  { %52 = vadd.xlane.f32.xlu0 %v51_v3 }
   0x8   :  { %17 = vsyncpa [#allocation3], 0  ;;  %v1786_v14 = vld [vmem:[%s2246_s1 + $0x8] sm:$0xff]   ;;  %v1860_v15 = vmov 0.0   ;;  %vm1861_vm1 = vmmov 0   ;;  %v1787_v16 = vld [vmem:[%s2246_s1] sm:$0xff]   ;;  %v152_v44 = vlaneseq }
   0x9   :  { %1614 = vmatprep.subr.bf16.mxu1 %v1860_v15  ;;  %1618 = vmatprep.mubr.msk.bf16.mxu1 %vm1861_vm1, %v1860_v15  ;;  %v1518_v25 = vld [vmem:[%s2249_s4] ss:$0 sm:$0xff]  ;;  %s1862_s4 = smov 96   ;;  %vm170_vm2 = vcmask 64512   ;;  %s1864_s13 = smov 120   ;;  %vm301_vm4 = vcmask 1043456  }
   0xa   :  { %1615 = vmatpush3.bf16.msra.mxu1 %v1786_v14  ;;  %1640 = vmatprep.subr.bf16.mxu0 %v1860_v15  ;;  %v1519_v29 = vld [vmem:[%s2250_s5] ss:$0 sm:$0xff]  ;;  %v153_v45 = vshrl.u32 %v152_v44, 7  ;;  %v155_v46 = vand.u32 127, %v152_v44  ;;  %s1863_s5 = smov 64   ;;  %s1865_s14 = smov 88  }
   0xb   :  { %1616 = vmatprep.subr.bf16.mxu1 %v1860_v15  ;;  %1642 = vmatprep.mubr.msk.bf16.mxu0 %vm1861_vm1, %v1860_v15  ;;  %s1866_s17 = smov 56   ;;  %s1867_s18 = smov 80  }
   0xc   :  { %vm2000_vm3 = vcmp.le.s32.totalorder %v155_v46, %v153_v45  ;;  %s1868_s19 = smov 112   ;;  %s1870_s24 = smov 72  }
   0xd   :  { %s1871_s0 = smov 104   ;;  %s1872_s27 = smov 40  }
   0xe   :  { %1617 = vmatpush3.bf16.msra.mxu1 %v1787_v16 }
   0xf   :  { %1622 = vmatprep.subr.bf16.mxu1 %v1860_v15 }
  0x8c   :  { %v50_v4 = vpop.xlane.xlu0 %49 }
  0x8d   :  { %v55_v5 = vmul.f32 0.03125, %v50_v4 }
  0x8f   :  { %v57_v6 = vsub.f32 %v1944_v0, %v55_v5 }
  0x90   :  { %v53_v7 = vpop.xlane.xlu0 %52 }
  0x91   :  { %v56_v8 = vmul.f32 0.03125, %v53_v7  ;;  %v59_v9 = vmul.f32 %v57_v6, %v57_v6 }
  0x93   :  { %v58_v10 = vsub.f32 %v1949_v1, %v56_v8  ;;  %v61_v11 = vsel %vm47_vm0, %v59_v9, 0.0 }
  0x94   :  { %62 = vadd.xlane.f32.xlu1 %v61_v11 }
  0x95   :  { %v60_v12 = vmul.f32 %v58_v10, %v58_v10 }
  0x97   :  { %v64_v13 = vsel %vm47_vm0, %v60_v12, 0.0 }
  0x98   :  { %65 = vadd.xlane.f32.xlu1 %v64_v13 }
 0x11d   :  { %v63_v17 = vpop.xlane.xlu1 %62 }
 0x11e   :  { %v67_v18 = vmul.f32 0.03125, %v63_v17 }
 0x120   :  { %v69_v19 = vadd.f32 1e-05, %v67_v18 }
 0x121   :  { %v66_v20 = vpop.xlane.xlu1 %65 }
 0x122   :  { %1798 = vrsqrt.f32 %v69_v19  ;;  %v68_v21 = vmul.f32 0.03125, %v66_v20 }
 0x124   :  { %v70_v22 = vadd.f32 1e-05, %v68_v21 }
 0x126   :  { %1800 = vrsqrt.f32 %v70_v22 }
 0x12f   :  { %v1799_v23 = vpop.eup %1798 }
 0x130   :  { %v73_v24 = vmul.f32 %v1799_v23, %v57_v6 }
 0x132   :  { %v81_v28 = vmul.f32 %v1518_v25, %v73_v24 }
 0x133   :  { %v1801_v26 = vpop.eup %1800 }
 0x134   :  { %v74_v27 = vmul.f32 %v1801_v26, %v58_v10  ;;  %v89_v31 = vadd.f32 %v1519_v29, %v81_v28  ;;  %v394_v26 = vld [vmem:[%s2247_s2] sm:$0xf] }
 0x136   :  { %v82_v30 = vmul.f32 %v1518_v25, %v74_v27  ;;  %v399_v27 = vsel %vm301_vm4, %v394_v26, 0 }
 0x138   :  { %v90_v32 = vadd.f32 %v1519_v29, %v82_v30 }
 0x13a   :  { %v91_v33 = vpack.c.bf16 %v90_v32, %v89_v31 }
 0x13c   :  { %1619 = vmatmul.mubr.msk.bf16.vlgmr.msra.gmra.mxu1 %vm47_vm0, %v91_v33 }
 0x13d   :  { %1624 = vmatprep.mubr.msk.bf16.mxu1 %vm1861_vm1, %v1860_v15 }
 0x1fc   :  { %v145_v34 = vpop.f32.mrf.mxu1 }
 0x1fd   :  { %v1982_v35 = vpack.c.bf16 %v145_v34, %v145_v34 }
 0x1fe   :  { %v1620_v36 = vpop.f32.mrf.mxu1 }
 0x1ff   :  { %168 = vrot.lane.b32.xlu0 %v1982_v35, %s1862_s4 }
 0x200   :  { %v148_v37 = vpop.f32.mrf.mxu1 }
 0x201   :  { %v1985_v38 = vpack.c.bf16 %v148_v37, %v148_v37 }
 0x202   :  { %v1621_v39 = vpop.f32.mrf.mxu1 }
 0x203   :  { %218 = vrot.lane.b32.xlu1 %v1985_v38, %s1862_s4 }
 0x271   :  { %v169_v40 = vpop.permute.xlu0 %168 }
 0x272   :  { %v175_v41 = vsel %vm170_vm2, %v169_v40, 0 }
 0x273   :  { %1623 = vmatpush3.bf16.xpose.msra.mxu1 %v175_v41 }
 0x274   :  { %1628 = vmatprep.subr.bf16.mxu1 %v1860_v15 }
 0x275   :  { %v219_v42 = vpop.permute.xlu1 %218 }
 0x276   :  { %v224_v43 = vsel %vm170_vm2, %v219_v42, 0 }
 0x27a   :  { %1625 = vmatmul.mubr.msk.bf16.vlgmr.msra.gmra.mxu1 %vm170_vm2, %v1982_v35 }
 0x27b   :  { %1629 = vmatpush3.bf16.xpose.msra.mxu1 %v224_v43  ;;  %1630 = vmatprep.mubr.msk.bf16.mxu1 %vm1861_vm1, %v1860_v15 }
 0x27c   :  { %1634 = vmatprep.subr.bf16.mxu1 %v1860_v15 }
 0x282   :  { %1631 = vmatmul.mubr.msk.bf16.vlgmr.msra.gmra.mxu1 %vm170_vm2, %v1985_v38 }
 0x283   :  { %1636 = vmatprep.mubr.msk.bf16.mxu1 %vm1861_vm1, %v1860_v15 }
 0x33a   :  { %v211_v47 = vpop.f32.mrf.mxu1 }
 0x33b   :  { %v266_v49 = vmul.f32 0.17677669, %v211_v47 }
 0x33c   :  { %v1626_v50 = vpop.f32.mrf.mxu1 }
 0x33d   :  { %v270_v51 = vsel %vm2000_vm3, %v266_v49, -inf }
 0x33e   :  { %v214_v52 = vpop.f32.mrf.mxu1  ;;  %v272_v53 = vsel %vm170_vm2, %v270_v51, -inf }
 0x33f   :  { %273 = vmax.xlane.f32.xlu1 %v272_v53 }
 0x340   :  { %v1627_v54 = vpop.f32.mrf.mxu1 }
 0x342   :  { %v260_v55 = vpop.f32.mrf.mxu1 }
 0x343   :  { %v267_v56 = vmul.f32 0.17677669, %v260_v55 }
 0x344   :  { %v1632_v57 = vpop.f32.mrf.mxu1 }
 0x345   :  { %v271_v58 = vsel %vm2000_vm3, %v267_v56, -inf }
 0x346   :  { %v263_v59 = vpop.f32.mrf.mxu1  ;;  %v275_v60 = vsel %vm170_vm2, %v271_v58, -inf }
 0x347   :  { %276 = vmax.xlane.f32.xlu0 %v275_v60 }
 0x348   :  { %v1633_v61 = vpop.f32.mrf.mxu1 }
 0x3c8   :  { %v274_v62 = vpop.xlane.xlu1 %273 }
 0x3c9   :  { %v278_v63 = vsub.f32 %v270_v51, %v274_v62 }
 0x3cb   :  { %v280_v2 = vmul.f32 1.442695, %v278_v63 }
 0x3cd   :  { %1802 = vpow2.f32 %v280_v2 }
 0x3d0   :  { %v277_v3 = vpop.xlane.xlu0 %276 }
 0x3d1   :  { %v279_v4 = vsub.f32 %v271_v58, %v277_v3 }
 0x3d3   :  { %v282_v5 = vmul.f32 1.442695, %v279_v4 }
 0x3d5   :  { %1804 = vpow2.f32 %v282_v5 }
 0x3da   :  { %v1803_v6 = vpop.eup %1802 }
 0x3db   :  { %v284_v7 = vsel %vm170_vm2, %v1803_v6, 0.0 }
 0x3dc   :  { %285 = vadd.xlane.f32.xlu0 %v284_v7 }
 0x3e2   :  { %v1805_v8 = vpop.eup %1804 }
 0x3e3   :  { %v287_v9 = vsel %vm170_vm2, %v1805_v8, 0.0 }
 0x3e4   :  { %288 = vadd.xlane.f32.xlu1 %v287_v9 }
 0x3f2   :  { %296 = vrot.lane.b32.xlu0 %v1982_v35, %s1863_s5 }
 0x3f5   :  { %345 = vrot.lane.b32.xlu1 %v1985_v38, %s1863_s5 }
 0x3f6   :  { %444 = vrot.lane.b32.xlu0 %v1982_v35, %s1864_s13 }
 0x3f9   :  { %446 = vrot.lane.b32.xlu1 %v1982_v35, %s1865_s14 }
 0x3fd   :  { %496 = vrot.lane.b32.xlu1 %v1985_v38, %s1865_s14 }
 0x401   :  { %494 = vrot.lane.b32.xlu1 %v1985_v38, %s1864_s13 }
 0x465   :  { %v286_v10 = vpop.xlane.xlu0 %285 }
 0x466   :  { %1806 = vrcp.f32 %v286_v10 }
 0x469   :  { %v297_v11 = vpop.permute.xlu0 %296 }
 0x46a   :  { %v303_v12 = vsel %vm301_vm4, %v297_v11, 0 }
 0x46b   :  { %1635 = vmatpush3.bf16.msra.mxu1 %v303_v12 }
 0x46c   :  { %1646 = vmatprep.subr.bf16.mxu1 %v1860_v15 }
 0x46d   :  { %v289_v13 = vpop.xlane.xlu1 %288  ;;  %v445_v25 = vpop.permute.xlu0 %444 }
 0x46e   :  { %1808 = vrcp.f32 %v289_v13 }
 0x471   :  { %v346_v14 = vpop.permute.xlu1 %345 }
 0x472   :  { %v351_v16 = vsel %vm301_vm4, %v346_v14, 0 }
 0x473   :  { %v1807_v17 = vpop.eup %1806  ;;  %1641 = vmatpush3.bf16.msra.mxu0 %v351_v16 }
 0x474   :  { %v292_v18 = vmul.f32 %v1807_v17, %v1803_v6  ;;  %1652 = vmatprep.subr.bf16.mxu0 %v1860_v15 }
 0x475   :  { %v447_v22 = vpop.permute.xlu1 %446 }
 0x476   :  { %v294_v19 = vpack.c.bf16 %v292_v18, %v292_v18  ;;  %v452_v24 = vsel %vm170_vm2, %v447_v22, 0 }
 0x478   :  { %1637 = vmatmul.mubr.msk.bf16.vlgmr.msra.gmra.mxu1 %vm170_vm2, %v294_v19 }
 0x479   :  { %1648 = vmatprep.mubr.msk.bf16.mxu1 %vm1861_vm1, %v1860_v15  ;;  %1647 = vmatpush3.bf16.msra.mxu1 %v399_v27  ;;  %v497_v32 = vpop.permute.xlu1 %496 }
 0x47a   :  { %1658 = vmatprep.subr.bf16.mxu1 %v1860_v15  ;;  %v502_v37 = vsel %vm170_vm2, %v497_v32, 0 }
 0x47b   :  { %v1809_v20 = vpop.eup %1808 }
 0x47c   :  { %v293_v21 = vmul.f32 %v1809_v20, %v1805_v8 }
 0x47d   :  { %v495_v43 = vpop.permute.xlu1 %494 }
 0x47e   :  { %v295_v23 = vpack.c.bf16 %v293_v21, %v293_v21 }
 0x480   :  { %1643 = vmatmul.mubr.msk.bf16.vlgmr.msra.gmra.mxu0 %vm170_vm2, %v295_v23 }
 0x481   :  { %1653 = vmatpush3.bf16.xpose.msra.mxu0 %v452_v24  ;;  %1654 = vmatprep.mubr.msk.bf16.mxu0 %vm1861_vm1, %v1860_v15 }
 0x482   :  { %1664 = vmatprep.subr.bf16.mxu0 %v1860_v15 }
 0x488   :  { %1655 = vmatmul.mubr.msk.bf16.vlgmr.msra.gmra.mxu0 %vm170_vm2, %v445_v25  ;;  %v669_v25 = vld [vmem:[%s2247_s2 + $0x4] sm:$0xf] }
 0x489   :  { %1666 = vmatprep.mubr.msk.bf16.mxu0 %vm1861_vm1, %v1860_v15  ;;  %v674_v26 = vsel %vm301_vm4, %v669_v25, 0 }
 0x538   :  { %v339_v28 = vpop.f32.mrf.mxu1 }
 0x53a   :  { %v1638_v29 = vpop.f32.mrf.mxu1 }
 0x53c   :  { %v342_v30 = vpop.f32.mrf.mxu1 }
 0x53e   :  { %v1639_v31 = vpop.f32.mrf.mxu1 }
 0x540   :  { %v387_v33 = vpop.f32.mrf.mxu0 }
 0x541   :  { %v393_v34 = vpack.c.bf16 %v387_v33, %v339_v28 }
 0x542   :  { %v1644_v36 = vpop.f32.mrf.mxu0 }
 0x543   :  { %1649 = vmatmul.mubr.msk.bf16.vlgmr.msra.gmra.mxu1 %vm170_vm2, %v393_v34 }
 0x544   :  { %1659 = vmatpush3.bf16.xpose.msra.mxu1 %v502_v37  ;;  %v390_v39 = vpop.f32.mrf.mxu0  ;;  %1660 = vmatprep.mubr.msk.bf16.mxu1 %vm1861_vm1, %v1860_v15 }
 0x545   :  { %1670 = vmatprep.subr.bf16.mxu1 %v1860_v15 }
 0x546   :  { %v1645_v40 = vpop.f32.mrf.mxu0 }
 0x548   :  { %v488_v41 = vpop.f32.mrf.mxu0 }
 0x549   :  { %v544_v42 = vmul.f32 0.17677669, %v488_v41 }
 0x54a   :  { %v1656_v44 = vpop.f32.mrf.mxu0 }
 0x54b   :  { %1661 = vmatmul.mubr.msk.bf16.vlgmr.msra.gmra.mxu1 %vm170_vm2, %v495_v43  ;;  %v546_v45 = vsel %vm2000_vm3, %v544_v42, -inf }
 0x54c   :  { %v491_v46 = vpop.f32.mrf.mxu0  ;;  %v548_v47 = vsel %vm170_vm2, %v546_v45, -inf  ;;  %1672 = vmatprep.mubr.msk.bf16.mxu1 %vm1861_vm1, %v1860_v15 }
 0x54d   :  { %549 = vmax.xlane.f32.xlu0 %v548_v47 }
 0x54e   :  { %v1657_v49 = vpop.f32.mrf.mxu0 }
 0x5d6   :  { %v550_v50 = vpop.xlane.xlu0 %549 }
 0x5d7   :  { %v554_v51 = vsub.f32 %v546_v45, %v550_v50 }
 0x5d9   :  { %v556_v52 = vmul.f32 1.442695, %v554_v51 }
 0x5db   :  { %1810 = vpow2.f32 %v556_v52 }
 0x5e8   :  { %v1811_v53 = vpop.eup %1810 }
 0x5e9   :  { %v560_v54 = vsel %vm170_vm2, %v1811_v53, 0.0 }
 0x5ea   :  { %561 = vadd.xlane.f32.xlu0 %v560_v54  ;;  %v1523_v54 = vld [vmem:[%s2248_s3] ss:$0 sm:$0xff]  ;;  %s1869_s3 = smov 48  }
 0x603   :  { %v2050_v55 = vpop.f32.mrf.mxu1 }
 0x605   :  { %v1650_v56 = vpop.f32.mrf.mxu1 }
 0x606   :  { %v442_v56 = vadd.f32 %v1523_v54, %v2050_v55 }
 0x607   :  { %v2052_v57 = vpop.f32.mrf.mxu1 }
 0x609   :  { %v1651_v58 = vpop.f32.mrf.mxu1 }
 0x60b   :  { %v538_v59 = vpop.f32.mrf.mxu1 }
 0x60c   :  { %v545_v60 = vmul.f32 0.17677669, %v538_v59 }
 0x60d   :  { %v1662_v61 = vpop.f32.mrf.mxu1 }
 0x60e   :  { %v547_v62 = vsel %vm2000_vm3, %v545_v60, -inf  ;;  %v443_v61 = vadd.f32 %v1523_v54, %v2052_v57 }
 0x60f   :  { %v541_v63 = vpop.f32.mrf.mxu1  ;;  %v551_v2 = vsel %vm170_vm2, %v547_v62, -inf }
 0x610   :  { %552 = vmax.xlane.f32.xlu1 %v551_v2 }
 0x611   :  { %v1663_v3 = vpop.f32.mrf.mxu1 }
 0x621   :  { %620 = vrot.lane.b32.xlu1 %v1985_v38, %s1866_s17 }
 0x625   :  { %721 = vrot.lane.b32.xlu1 %v1982_v35, %s1867_s18 }
 0x629   :  { %771 = vrot.lane.b32.xlu1 %v1985_v38, %s1867_s18 }
 0x62d   :  { %769 = vrot.lane.b32.xlu1 %v1985_v38, %s1868_s19 }
 0x673   :  { %v562_v11 = vpop.xlane.xlu0 %561 }
 0x699   :  { %v553_v4 = vpop.xlane.xlu1 %552 }
 0x69a   :  { %v555_v5 = vsub.f32 %v547_v62, %v553_v4 }
 0x69c   :  { %v558_v6 = vmul.f32 1.442695, %v555_v5 }
 0x69d   :  { %v621_v7 = vpop.permute.xlu1 %620 }
 0x69e   :  { %1812 = vpow2.f32 %v558_v6  ;;  %v626_v8 = vsel %vm301_vm4, %v621_v7, 0 }
 0x69f   :  { %1671 = vmatpush3.bf16.msra.mxu1 %v626_v8  ;;  %1814 = vrcp.f32 %v562_v11 }
 0x6a0   :  { %1682 = vmatprep.subr.bf16.mxu1 %v1860_v15 }
 0x6a1   :  { %v722_v21 = vpop.permute.xlu1 %721 }
 0x6a2   :  { %v727_v23 = vsel %vm170_vm2, %v722_v21, 0 }
 0x6a5   :  { %v772_v31 = vpop.permute.xlu1 %771 }
 0x6a6   :  { %v777_v36 = vsel %vm170_vm2, %v772_v31, 0 }
 0x6a9   :  { %v770_v42 = vpop.permute.xlu1 %769 }
 0x6ab   :  { %v1813_v9 = vpop.eup %1812 }
 0x6ac   :  { %v563_v10 = vsel %vm170_vm2, %v1813_v9, 0.0  ;;  %v1815_v12 = vpop.eup %1814 }
 0x6ad   :  { %564 = vadd.xlane.f32.xlu0 %v563_v10  ;;  %v568_v14 = vmul.f32 %v1815_v12, %v1811_v53 }
 0x6af   :  { %v570_v18 = vpack.c.bf16 %v568_v14, %v568_v14 }
 0x6c3   :  { %572 = vrot.lane.b32.xlu0 %v1982_v35, %s1866_s17 }
 0x6c7   :  { %719 = vrot.lane.b32.xlu0 %v1982_v35, %s1868_s19 }
 0x736   :  { %v565_v13 = vpop.xlane.xlu0 %564 }
 0x737   :  { %1816 = vrcp.f32 %v565_v13 }
 0x73a   :  { %v573_v16 = vpop.permute.xlu0 %572 }
 0x73b   :  { %v578_v17 = vsel %vm301_vm4, %v573_v16, 0 }
 0x73c   :  { %1665 = vmatpush3.bf16.msra.mxu0 %v578_v17 }
 0x73d   :  { %1676 = vmatprep.subr.bf16.mxu0 %v1860_v15 }
 0x73e   :  { %v720_v24 = vpop.permute.xlu0 %719 }
 0x73f   :  { %1667 = vmatmul.mubr.msk.bf16.vlgmr.msra.gmra.mxu0 %vm170_vm2, %v570_v18 }
 0x740   :  { %1678 = vmatprep.mubr.msk.bf16.mxu0 %vm1861_vm1, %v1860_v15  ;;  %1677 = vmatpush3.bf16.msra.mxu0 %v674_v26 }
 0x741   :  { %1688 = vmatprep.subr.bf16.mxu0 %v1860_v15 }
 0x744   :  { %v1817_v19 = vpop.eup %1816 }
 0x745   :  { %v569_v20 = vmul.f32 %v1817_v19, %v1813_v9 }
 0x747   :  { %v571_v22 = vpack.c.bf16 %v569_v20, %v569_v20 }
 0x749   :  { %1673 = vmatmul.mubr.msk.bf16.vlgmr.msra.gmra.mxu1 %vm170_vm2, %v571_v22 }
 0x74a   :  { %1683 = vmatpush3.bf16.xpose.msra.mxu1 %v727_v23  ;;  %1684 = vmatprep.mubr.msk.bf16.mxu1 %vm1861_vm1, %v1860_v15 }
 0x74b   :  { %1694 = vmatprep.subr.bf16.mxu1 %v1860_v15 }
 0x751   :  { %1685 = vmatmul.mubr.msk.bf16.vlgmr.msra.gmra.mxu1 %vm170_vm2, %v720_v24 }
 0x752   :  { %1696 = vmatprep.mubr.msk.bf16.mxu1 %vm1861_vm1, %v1860_v15 }
 0x7ff   :  { %v614_v27 = vpop.f32.mrf.mxu0 }
 0x801   :  { %v1668_v28 = vpop.f32.mrf.mxu0 }
 0x803   :  { %v617_v29 = vpop.f32.mrf.mxu0 }
 0x804   :  { %v944_v29 = vld [vmem:[%s2247_s2 + $0x8] sm:$0xf] }
 0x805   :  { %v1669_v30 = vpop.f32.mrf.mxu0 }
 0x806   :  { %v949_v30 = vsel %vm301_vm4, %v944_v29, 0 }
 0x809   :  { %v662_v32 = vpop.f32.mrf.mxu1 }
 0x80a   :  { %v668_v33 = vpack.c.bf16 %v662_v32, %v614_v27 }
 0x80b   :  { %v1674_v34 = vpop.f32.mrf.mxu1 }
 0x80c   :  { %1679 = vmatmul.mubr.msk.bf16.vlgmr.msra.gmra.mxu0 %vm170_vm2, %v668_v33 }
 0x80d   :  { %1689 = vmatpush3.bf16.xpose.msra.mxu0 %v777_v36  ;;  %v665_v37 = vpop.f32.mrf.mxu1  ;;  %1690 = vmatprep.mubr.msk.bf16.mxu0 %vm1861_vm1, %v1860_v15 }
 0x80e   :  { %1700 = vmatprep.subr.bf16.mxu0 %v1860_v15 }
 0x80f   :  { %v1675_v39 = vpop.f32.mrf.mxu1 }
 0x811   :  { %v763_v40 = vpop.f32.mrf.mxu1 }
 0x812   :  { %v819_v41 = vmul.f32 0.17677669, %v763_v40 }
 0x813   :  { %v1686_v43 = vpop.f32.mrf.mxu1 }
 0x814   :  { %1691 = vmatmul.mubr.msk.bf16.vlgmr.msra.gmra.mxu0 %vm170_vm2, %v770_v42  ;;  %v821_v44 = vsel %vm2000_vm3, %v819_v41, -inf }
 0x815   :  { %v766_v45 = vpop.f32.mrf.mxu1  ;;  %v823_v46 = vsel %vm170_vm2, %v821_v44, -inf  ;;  %1702 = vmatprep.mubr.msk.bf16.mxu0 %vm1861_vm1, %v1860_v15 }
 0x816   :  { %824 = vmax.xlane.f32.xlu0 %v823_v46 }
 0x817   :  { %v1687_v47 = vpop.f32.mrf.mxu1 }
 0x89f   :  { %v825_v49 = vpop.xlane.xlu0 %824 }
 0x8a0   :  { %v829_v50 = vsub.f32 %v821_v44, %v825_v49 }
 0x8a2   :  { %v831_v51 = vmul.f32 1.442695, %v829_v50 }
 0x8a4   :  { %1818 = vpow2.f32 %v831_v51 }
 0x8b1   :  { %v1819_v52 = vpop.eup %1818 }
 0x8b2   :  { %v835_v53 = vsel %vm170_vm2, %v1819_v52, 0.0 }
 0x8b3   :  { %836 = vadd.xlane.f32.xlu0 %v835_v53 }
 0x8cc   :  { %v710_v58 = vpop.f32.mrf.mxu0 }
 0x8cd   :  { %v2100_v59 = vadd.f32 %v710_v58, %v442_v56 }
 0x8ce   :  { %v1680_v60 = vpop.f32.mrf.mxu0 }
 0x8d0   :  { %v713_v62 = vpop.f32.mrf.mxu0 }
 0x8d1   :  { %v2103_v63 = vadd.f32 %v713_v62, %v443_v61 }
 0x8d2   :  { %v1681_v2 = vpop.f32.mrf.mxu0 }
 0x8d4   :  { %v813_v3 = vpop.f32.mrf.mxu0 }
 0x8d5   :  { %v820_v4 = vmul.f32 0.17677669, %v813_v3 }
 0x8d6   :  { %v1692_v5 = vpop.f32.mrf.mxu0 }
 0x8d7   :  { %v822_v6 = vsel %vm2000_vm3, %v820_v4, -inf }
 0x8d8   :  { %v816_v7 = vpop.f32.mrf.mxu0  ;;  %v826_v8 = vsel %vm170_vm2, %v822_v6, -inf }
 0x8d9   :  { %827 = vmax.xlane.f32.xlu1 %v826_v8 }
 0x8da   :  { %v1693_v55 = vpop.f32.mrf.mxu0 }
 0x8ea   :  { %895 = vrot.lane.b32.xlu1 %v1985_v38, %s1869_s3 }
 0x8ee   :  { %996 = vrot.lane.b32.xlu1 %v1982_v35, %s1870_s24 }
 0x8f2   :  { %1046 = vrot.lane.b32.xlu1 %v1985_v38, %s1870_s24 }
 0x8f6   :  { %1044 = vrot.lane.b32.xlu1 %v1985_v38, %s1871_s0 }
 0x93c   :  { %v837_v16 = vpop.xlane.xlu0 %836 }
 0x962   :  { %v828_v57 = vpop.xlane.xlu1 %827 }
 0x963   :  { %v830_v9 = vsub.f32 %v822_v6, %v828_v57 }
 0x965   :  { %v833_v10 = vmul.f32 1.442695, %v830_v9 }
 0x966   :  { %v896_v11 = vpop.permute.xlu1 %895 }
 0x967   :  { %1820 = vpow2.f32 %v833_v10  ;;  %v901_v12 = vsel %vm301_vm4, %v896_v11, 0 }
 0x968   :  { %1701 = vmatpush3.bf16.msra.mxu0 %v901_v12  ;;  %1822 = vrcp.f32 %v837_v16 }
 0x969   :  { %1712 = vmatprep.subr.bf16.mxu0 %v1860_v15 }
 0x96a   :  { %v997_v25 = vpop.permute.xlu1 %996 }
 0x96b   :  { %v1002_v27 = vsel %vm170_vm2, %v997_v25, 0 }
 0x96e   :  { %v1047_v36 = vpop.permute.xlu1 %1046 }
 0x96f   :  { %v1052_v41 = vsel %vm170_vm2, %v1047_v36, 0 }
 0x972   :  { %v1045_v46 = vpop.permute.xlu1 %1044 }
 0x974   :  { %v1821_v13 = vpop.eup %1820 }
 0x975   :  { %v838_v14 = vsel %vm170_vm2, %v1821_v13, 0.0  ;;  %v1823_v17 = vpop.eup %1822 }
 0x976   :  { %839 = vadd.xlane.f32.xlu0 %v838_v14  ;;  %v843_v19 = vmul.f32 %v1823_v17, %v1819_v52 }
 0x978   :  { %v845_v22 = vpack.c.bf16 %v843_v19, %v843_v19 }
 0x98c   :  { %847 = vrot.lane.b32.xlu0 %v1982_v35, %s1869_s3 }
 0x990   :  { %994 = vrot.lane.b32.xlu0 %v1982_v35, %s1871_s0 }
 0x9ff   :  { %v840_v18 = vpop.xlane.xlu0 %839 }
 0xa00   :  { %1824 = vrcp.f32 %v840_v18 }
 0xa03   :  { %v848_v20 = vpop.permute.xlu0 %847 }
 0xa04   :  { %v853_v21 = vsel %vm301_vm4, %v848_v20, 0 }
 0xa05   :  { %1695 = vmatpush3.bf16.msra.mxu1 %v853_v21 }
 0xa06   :  { %1706 = vmatprep.subr.bf16.mxu1 %v1860_v15 }
 0xa07   :  { %v995_v28 = vpop.permute.xlu0 %994 }
 0xa08   :  { %1697 = vmatmul.mubr.msk.bf16.vlgmr.msra.gmra.mxu1 %vm170_vm2, %v845_v22 }
 0xa09   :  { %1708 = vmatprep.mubr.msk.bf16.mxu1 %vm1861_vm1, %v1860_v15  ;;  %1707 = vmatpush3.bf16.msra.mxu1 %v949_v30 }
 0xa0a   :  { %1718 = vmatprep.subr.bf16.mxu1 %v1860_v15 }
 0xa0d   :  { %v1825_v23 = vpop.eup %1824 }
 0xa0e   :  { %v844_v24 = vmul.f32 %v1825_v23, %v1821_v13 }
 0xa10   :  { %v846_v26 = vpack.c.bf16 %v844_v24, %v844_v24  ;;  %v1219_v24 = vld [vmem:[%s2247_s2 + $0xc] sm:$0xf] }
 0xa11   :  { %v1224_v25 = vsel %vm301_vm4, %v1219_v24, 0 }
 0xa12   :  { %1703 = vmatmul.mubr.msk.bf16.vlgmr.msra.gmra.mxu0 %vm170_vm2, %v846_v26 }
 0xa13   :  { %1713 = vmatpush3.bf16.xpose.msra.mxu0 %v1002_v27  ;;  %1714 = vmatprep.mubr.msk.bf16.mxu0 %vm1861_vm1, %v1860_v15 }
 0xa14   :  { %1724 = vmatprep.subr.bf16.mxu0 %v1860_v15 }
 0xa1a   :  { %1715 = vmatmul.mubr.msk.bf16.vlgmr.msra.gmra.mxu0 %vm170_vm2, %v995_v28 }
 0xa1b   :  { %1726 = vmatprep.mubr.msk.bf16.mxu0 %vm1861_vm1, %v1860_v15 }
 0xac8   :  { %v889_v31 = vpop.f32.mrf.mxu1 }
 0xaca   :  { %v1698_v32 = vpop.f32.mrf.mxu1 }
 0xacc   :  { %v892_v33 = vpop.f32.mrf.mxu1 }
 0xace   :  { %v1699_v34 = vpop.f32.mrf.mxu1 }
 0xad2   :  { %v937_v37 = vpop.f32.mrf.mxu0 }
 0xad3   :  { %v943_v39 = vpack.c.bf16 %v937_v37, %v889_v31 }
 0xad4   :  { %v1704_v40 = vpop.f32.mrf.mxu0 }
 0xad5   :  { %1709 = vmatmul.mubr.msk.bf16.vlgmr.msra.gmra.mxu1 %vm170_vm2, %v943_v39 }
 0xad6   :  { %1719 = vmatpush3.bf16.xpose.msra.mxu1 %v1052_v41  ;;  %v940_v42 = vpop.f32.mrf.mxu0  ;;  %1720 = vmatprep.mubr.msk.bf16.mxu1 %vm1861_vm1, %v1860_v15 }
 0xad7   :  { %1730 = vmatprep.subr.bf16.mxu1 %v1860_v15 }
 0xad8   :  { %v1705_v43 = vpop.f32.mrf.mxu0 }
 0xada   :  { %v1038_v44 = vpop.f32.mrf.mxu0 }
 0xadb   :  { %v1094_v45 = vmul.f32 0.17677669, %v1038_v44 }
 0xadc   :  { %v1716_v47 = vpop.f32.mrf.mxu0 }
 0xadd   :  { %1721 = vmatmul.mubr.msk.bf16.vlgmr.msra.gmra.mxu1 %vm170_vm2, %v1045_v46  ;;  %v1096_v49 = vsel %vm2000_vm3, %v1094_v45, -inf }
 0xade   :  { %v1041_v50 = vpop.f32.mrf.mxu0  ;;  %v1098_v51 = vsel %vm170_vm2, %v1096_v49, -inf  ;;  %1732 = vmatprep.mubr.msk.bf16.mxu1 %vm1861_vm1, %v1860_v15 }
 0xadf   :  { %1099 = vmax.xlane.f32.xlu0 %v1098_v51 }
 0xae0   :  { %v1717_v52 = vpop.f32.mrf.mxu0 }
 0xb68   :  { %v1100_v53 = vpop.xlane.xlu0 %1099 }
 0xb69   :  { %v1104_v54 = vsub.f32 %v1096_v49, %v1100_v53 }
 0xb6b   :  { %v1106_v56 = vmul.f32 1.442695, %v1104_v54 }
 0xb6d   :  { %1826 = vpow2.f32 %v1106_v56 }
 0xb7a   :  { %v1827_v58 = vpop.eup %1826 }
 0xb7b   :  { %v1110_v60 = vsel %vm170_vm2, %v1827_v58, 0.0 }
 0xb7c   :  { %1111 = vadd.xlane.f32.xlu0 %v1110_v60  ;;  %v1789_v60 = vld [vmem:[%s2253_s8] sm:$0xff]  }
 0xb95   :  { %v985_v61 = vpop.f32.mrf.mxu1 }
 0xb96   :  { %v992_v62 = vadd.f32 %v985_v61, %v2100_v59  ;;  %v1790_v61 = vld [vmem:[%s2255_s10 + $0x38] sm:$0xff]  }
 0xb97   :  { %v1710_v2 = vpop.f32.mrf.mxu1 }
 0xb98   :  { %v1792_v2 = vld [vmem:[%s2255_s10 + $0x28] sm:$0xff]  }
 0xb99   :  { %v988_v3 = vpop.f32.mrf.mxu1 }
 0xb9a   :  { %v993_v4 = vadd.f32 %v988_v3, %v2103_v63  ;;  %v1793_v3 = vld [vmem:[%s2255_s10 + $0x20] sm:$0xff]  }
 0xb9b   :  { %v1711_v5 = vpop.f32.mrf.mxu1 }
 0xb9d   :  { %v1088_v6 = vpop.f32.mrf.mxu1 }
 0xb9e   :  { %v1095_v7 = vmul.f32 0.17677669, %v1088_v6 }
 0xb9f   :  { %v1722_v8 = vpop.f32.mrf.mxu1 }
 0xba0   :  { %v1097_v55 = vsel %vm2000_vm3, %v1095_v7, -inf }
 0xba1   :  { %v1091_v57 = vpop.f32.mrf.mxu1  ;;  %v1101_v9 = vsel %vm170_vm2, %v1097_v55, -inf }
 0xba2   :  { %1102 = vmax.xlane.f32.xlu1 %v1101_v9 }
 0xba3   :  { %v1723_v10 = vpop.f32.mrf.mxu1 }
 0xbb3   :  { %1170 = vrot.lane.b32.xlu1 %v1985_v38, %s1872_s27 }
 0xc05   :  { %v1112_v16 = vpop.xlane.xlu0 %1111 }
 0xc2b   :  { %v1103_v59 = vpop.xlane.xlu1 %1102 }
 0xc2c   :  { %v1105_v11 = vsub.f32 %v1097_v55, %v1103_v59  ;;  %v1544_v59 = vld [vmem:[%s2251_s6] ss:$0 sm:$0xff] }
 0xc2e   :  { %v1108_v12 = vmul.f32 1.442695, %v1105_v11 }
 0xc2f   :  { %v1171_v13 = vpop.permute.xlu1 %1170 }
 0xc30   :  { %1828 = vpow2.f32 %v1108_v12  ;;  %v1176_v63 = vsel %vm301_vm4, %v1171_v13, 0 }
 0xc31   :  { %1731 = vmatpush3.bf16.msra.mxu1 %v1176_v63  ;;  %1830 = vrcp.f32 %v1112_v16  ;;  %v1545_v63 = vld [vmem:[%s2252_s7] ss:$0 sm:$0xff] }
 0xc32   :  { %1742 = vmatprep.subr.bf16.mxu1 %v1860_v15 }
 0xc3d   :  { %v1829_v48 = vpop.eup %1828 }
 0xc3e   :  { %v1113_v14 = vsel %vm170_vm2, %v1829_v48, 0.0  ;;  %v1831_v17 = vpop.eup %1830 }
 0xc3f   :  { %1114 = vadd.xlane.f32.xlu0 %v1113_v14  ;;  %v1118_v18 = vmul.f32 %v1831_v17, %v1827_v58  ;;  %v1788_v58 = vld [vmem:[%s2253_s8 + $0x8] sm:$0xff]  }
 0xc41   :  { %v1120_v21 = vpack.c.bf16 %v1118_v18, %v1118_v18  ;;  %v1796_v18 = vld [vmem:[%s2255_s10 + $0x8] sm:$0xff]  }
 0xc55   :  { %1122 = vrot.lane.b32.xlu0 %v1982_v35, %s1872_s27 }
 0xcc8   :  { %v1115_v38 = vpop.xlane.xlu0 %1114 }
 0xcc9   :  { %1832 = vrcp.f32 %v1115_v38  ;;  %v1795_v38 = vld [vmem:[%s2255_s10 + $0x10] sm:$0xff]  }
 0xccc   :  { %v1123_v19 = vpop.permute.xlu0 %1122 }
 0xccd   :  { %v1128_v20 = vsel %vm301_vm4, %v1123_v19, 0  ;;  %v1797_v19 = vld [vmem:[%s2255_s10] sm:$0xff]  }
 0xcce   :  { %1725 = vmatpush3.bf16.msra.mxu0 %v1128_v20  ;;  %v1546_v20 = vld [vmem:[%s2254_s9] ss:$0 sm:$0xff]  ;;  %s1873_s9 = smov [#allocation2]  }
 0xccf   :  { %1736 = vmatprep.subr.bf16.mxu0 %v1860_v15 }
 0xcd1   :  { %1727 = vmatmul.mubr.msk.bf16.vlgmr.msra.gmra.mxu0 %vm170_vm2, %v1120_v21 }
 0xcd2   :  { %1738 = vmatprep.mubr.msk.bf16.mxu0 %vm1861_vm1, %v1860_v15  ;;  %1737 = vmatpush3.bf16.msra.mxu0 %v1224_v25 }
 0xcd3   :  { %1750 = vmatprep.subr.bf16.mxu0 %v1860_v15 }
 0xcd6   :  { %v1833_v22 = vpop.eup %1832 }
 0xcd7   :  { %v1119_v35 = vmul.f32 %v1833_v22, %v1829_v48 }
 0xcd9   :  { %v1121_v23 = vpack.c.bf16 %v1119_v35, %v1119_v35 }
 0xcdb   :  { %1733 = vmatmul.mubr.msk.bf16.vlgmr.msra.gmra.mxu1 %vm170_vm2, %v1121_v23 }
 0xcdc   :  { %1746 = vmatprep.mubr.msk.bf16.mxu1 %vm1861_vm1, %v1860_v15  ;;  %1743 = vmatpush3.bf16.msra.mxu1 %v1788_v58 }
 0xcdd   :  { %1744 = vmatprep.subr.bf16.mxu1 %v1860_v15 }
 0xce0   :  { %1745 = vmatpush3.bf16.msra.mxu1 %v1789_v60 }
 0xd91   :  { %v1164_v26 = vpop.f32.mrf.mxu0 }
 0xd93   :  { %v1728_v27 = vpop.f32.mrf.mxu0 }
 0xd95   :  { %v1167_v28 = vpop.f32.mrf.mxu0 }
 0xd97   :  { %v1729_v29 = vpop.f32.mrf.mxu0 }
 0xd9b   :  { %v1212_v30 = vpop.f32.mrf.mxu1 }
 0xd9c   :  { %v1218_v31 = vpack.c.bf16 %v1212_v30, %v1164_v26 }
 0xd9d   :  { %v1734_v32 = vpop.f32.mrf.mxu1 }
 0xd9e   :  { %1739 = vmatmul.mubr.msk.bf16.vlgmr.msra.gmra.mxu0 %vm170_vm2, %v1218_v31 }
 0xd9f   :  { %v1215_v33 = vpop.f32.mrf.mxu1  ;;  %1766 = vmatprep.mubr.msk.bf16.mxu0 %vm1861_vm1, %v1860_v15  ;;  %1751 = vmatpush3.bf16.msra.mxu0 %v1790_v61 }
 0xda0   :  { %1752 = vmatprep.subr.bf16.mxu0 %v1860_v15 }
 0xda1   :  { %v1735_v34 = vpop.f32.mrf.mxu1 }
 0xe5e   :  { %v1260_v36 = vpop.f32.mrf.mxu0 }
 0xe5f   :  { %v1267_v37 = vadd.f32 %v1260_v36, %v992_v62  ;;  %v1791_v62 = vld [vmem:[%s2255_s10 + $0x30] sm:$0xff]  }
 0xe60   :  { %v1740_v39 = vpop.f32.mrf.mxu0  ;;  %1753 = vmatpush3.bf16.msra.mxu0 %v1791_v62 }
 0xe61   :  { %v2174_v40 = vadd.f32 %v1267_v37, %v1944_v0  ;;  %1754 = vmatprep.subr.bf16.mxu0 %v1860_v15 }
 0xe62   :  { %v1263_v41 = vpop.f32.mrf.mxu0 }
 0xe63   :  { %v1268_v42 = vadd.f32 %v1263_v41, %v993_v4  ;;  %v1273_v43 = vsel %vm47_vm0, %v2174_v40, 0.0  ;;  %v1794_v4 = vld [vmem:[%s2255_s10 + $0x18] sm:$0xff]   ;;  %s1507_s10 = sshll.u32 %s1873_s9, 4  ;;  %s1508_s10 = int_to_ptr.vmem [resolvable:$true] %s1507_s10 }
 0xe64   :  { %1274 = vadd.xlane.f32.xlu1 %v1273_v43  ;;  %v1741_v44 = vpop.f32.mrf.mxu0  ;;  %1755 = vmatpush3.bf16.msra.mxu0 %v1792_v2  ;;  %s1838_s29 = scalar_lea.vmem %s1508_s10, 256  ;;  %p1843_p1 = scmp.lt.s32.totalorder %s1508_s10, %s1508_s10 }
 0xe65   :  { %v2179_v45 = vadd.f32 %v1268_v42, %v1949_v1  ;;  %1756 = vmatprep.subr.bf16.mxu0 %v1860_v15  ;;  %p1839_p0 = scmp.ne.s32.totalorder %s1508_s10, %s1838_s29  ;;  %p1844_p2 = scmp.lt.s32.totalorder %s1838_s29, %s1838_s29 }
 0xe67   :  { %v1276_v46 = vsel %vm47_vm0, %v2179_v45, 0.0  ;;  %p1845_p3 = por %p1844_p2, %p1843_p1 }
 0xe68   :  { %1277 = vadd.xlane.f32.xlu0 %v1276_v46  ;;  %1757 = vmatpush3.bf16.msra.mxu0 %v1793_v3 }
 0xe69   :  { %1758 = vmatprep.subr.bf16.mxu0 %v1860_v15  ;;  %p1846_p4 = pnand %p1845_p3, %p1839_p0 }
 0xe6c   :  { %1759 = vmatpush3.bf16.msra.mxu0 %v1794_v4 }
 0xe6d   :  { %1760 = vmatprep.subr.bf16.mxu0 %v1860_v15 }
 0xe70   :  { %1761 = vmatpush3.bf16.msra.mxu0 %v1795_v38 }
 0xe71   :  { %1762 = vmatprep.subr.bf16.mxu0 %v1860_v15 }
 0xe74   :  { %1763 = vmatpush3.bf16.msra.mxu0 %v1796_v18 }
 0xe75   :  { %1764 = vmatprep.subr.bf16.mxu0 %v1860_v15  ;;  %v1550_v15 = vld [vmem:[%s2256_s11] ss:$0 sm:$0xff] }
 0xe78   :  { %1765 = vmatpush3.bf16.msra.mxu0 %v1797_v19 }
 0xeed   :  { %v1275_v47 = vpop.xlane.xlu1 %1274 }
 0xeee   :  { %v1279_v49 = vmul.f32 0.03125, %v1275_v47 }
 0xef0   :  { %v1281_v50 = vsub.f32 %v2174_v40, %v1279_v49 }
 0xef1   :  { %v1278_v0 = vpop.xlane.xlu0 %1277 }
 0xef2   :  { %v1280_v51 = vmul.f32 0.03125, %v1278_v0  ;;  %v1283_v52 = vmul.f32 %v1281_v50, %v1281_v50 }
 0xef4   :  { %v1282_v53 = vsub.f32 %v2179_v45, %v1280_v51  ;;  %v1285_v54 = vsel %vm47_vm0, %v1283_v52, 0.0 }
 0xef5   :  { %1286 = vadd.xlane.f32.xlu0 %v1285_v54 }
 0xef6   :  { %v1284_v56 = vmul.f32 %v1282_v53, %v1282_v53 }
 0xef8   :  { %v1288_v1 = vsel %vm47_vm0, %v1284_v56, 0.0 }
 0xef9   :  { %1289 = vadd.xlane.f32.xlu1 %v1288_v1 }
 0xf7e   :  { %v1287_v5 = vpop.xlane.xlu0 %1286 }
 0xf7f   :  { %v1291_v6 = vmul.f32 0.03125, %v1287_v5 }
 0xf81   :  { %v1293_v7 = vadd.f32 1e-05, %v1291_v6 }
 0xf82   :  { %v1290_v8 = vpop.xlane.xlu1 %1289 }
 0xf83   :  { %1834 = vrsqrt.f32 %v1293_v7  ;;  %v1292_v55 = vmul.f32 0.03125, %v1290_v8 }
 0xf85   :  { %v1294_v57 = vadd.f32 1e-05, %v1292_v55 }
 0xf87   :  { %1836 = vrsqrt.f32 %v1294_v57 }
 0xf90   :  { %v1835_v9 = vpop.eup %1834 }
 0xf91   :  { %v1297_v10 = vmul.f32 %v1835_v9, %v1281_v50 }
 0xf93   :  { %v1305_v13 = vmul.f32 %v1544_v59, %v1297_v10 }
 0xf94   :  { %v1837_v11 = vpop.eup %1836 }
 0xf95   :  { %v1298_v12 = vmul.f32 %v1837_v11, %v1282_v53  ;;  %v1313_v14 = vadd.f32 %v1545_v63, %v1305_v13 }
 0xf97   :  { %v1306_v48 = vmul.f32 %v1544_v59, %v1298_v12 }
 0xf99   :  { %v1314_v16 = vadd.f32 %v1545_v63, %v1306_v48 }
 0xf9b   :  { %v1315_v17 = vpack.c.bf16 %v1314_v16, %v1313_v14 }
 0xf9d   :  { %1747 = vmatmul.mubr.msk.bf16.vlgmr.msra.gmra.mxu1 %vm47_vm0, %v1315_v17 }
0x105d   :  { %v1376_v21 = vpop.f32.mrf.mxu1 }
0x105e   :  { %v1377_v35 = vadd.f32 %v1546_v20, %v1376_v21 }
0x105f   :  { %v1748_v22 = vpop.f32.mrf.mxu1 }
0x1060   :  { %v1383_v26 = vmax.f32 %v1377_v35, 0.0 }
0x1061   :  { %v1379_v23 = vpop.f32.mrf.mxu1 }
0x1062   :  { %v1380_v24 = vadd.f32 %v1546_v20, %v1379_v23 }
0x1063   :  { %v1749_v25 = vpop.f32.mrf.mxu1 }
0x1064   :  { %v1384_v27 = vmax.f32 %v1380_v24, 0.0 }
0x1066   :  { %v1385_v28 = vpack.c.bf16 %v1384_v27, %v1383_v26 }
0x1068   :  { %1767 = vmatmul.mubr.bf16.vlgmr.msra.gmra.mxu0 %v1385_v28 }
0x1128   :  { %v1491_v29 = vpop.f32.mrf.mxu0 }
0x1129   :  { %v1492_v30 = vadd.f32 %v1550_v15, %v1491_v29 }
0x112a   :  { %v1768_v31 = vpop.f32.mrf.mxu0 }
0x112b   :  { %v1498_v32 = vadd.f32 %v1492_v30, %v2174_v40 }
0x112c   :  { %v1494_v33 = vpop.f32.mrf.mxu0 }
0x112d   :  { %1500 = vst.msk [vmem:[#allocation2] sm:$0xff] %vm47_vm0, %v1498_v32  ;;  %v1495_v34 = vadd.f32 %v1550_v15, %v1494_v33 }
0x112e   :  { %v1769_v36 = vpop.f32.mrf.mxu0 }
0x112f   :  { %v1499_v37 = vadd.f32 %v1495_v34, %v2179_v45 }
0x1131   :  { %1501 = vst.msk [vmem:[#allocation2 + $0x8] sm:$0xff] %vm47_vm0, %v1499_v37 }
0x1132   :  { %1849 = shalt.err (!%p1846_p4)
}
0x1133   :  { %s1874_s11 = smov 128   ;;  %s1875_s30 = smov 8  }
0x1134   :  { %1513 = dma.vmem_to_hbm [thread:$0]  %s1508_s10, 256, %s2257_s12, [#allocation3], %s1874_s11, %s1874_s11, %s1875_s30  }
0x1135   :  { %1858 = dma.done.wait [#allocation3], 256  }
0x1136   :  { %1859 = vsyncadd [#allocation3], 4294967040 }
0x1137   :  { %1517 = vsyncpa [#allocation3], 1 }

</bundles_post_ra>
